<compile_context>
chip_gen: v7x
topology: tpu7x:2x2x1
jax: 0.10.0
libtpu: 0.0.40
codegen_flags: <defaults>
</compile_context>

<pallas_src>
import math

import jax
import jax.numpy as jnp
from jax import lax
from jax.experimental import pallas as pl
from jax.experimental.pallas import tpu as pltpu

EPS = 0.0  # BatchNorm2d(N, False) -> eps = float(False) = 0.0


def _elu(y):
    """ELU(alpha=1)."""
    return jnp.where(y > 0.0, y, jnp.exp(jnp.minimum(y, 0.0)) - 1.0)


def _pick_block_batch(B, T):
    """Batch elements per grid step: aim for >=128 folded time-lanes of work,
    cap the unroll at 16, and keep >=2 grid steps when the batch allows it
    (feeds the second TensorCore on v7x)."""
    divisors = [d for d in range(1, B + 1) if B % d == 0 and d <= 16] or [1]
    big = [d for d in divisors if d * T >= 128]
    if big:
        two = [d for d in big if B // d >= 2]
        return min(two) if two else min(big)
    return max(divisors)


# ----------------------------------------------------------------------------
# Fused forward: one pallas_call, grid over blocks of Bt batch elements
# ----------------------------------------------------------------------------
def eegnet_forward(x, p, block_batch=None):
    B, CH, T = x.shape
    assert CH == 64, "channel dim must be 64 (conv1 (1,64) kernel, conv2 Cin=1)"
    assert T >= 12, "time dim must be >= 12 so the final pooled width is >= 1"

    Bt = block_batch if block_batch is not None else _pick_block_batch(B, T)
    assert B % Bt == 0, "block_batch must divide the batch size"

    f32 = jnp.float32
    OW2 = T + 2                      # conv2 output width
    OW2P = (OW2 - 2) // 4 + 1        # pooling2 output width
    OW3 = OW2P                       # conv3 output width (pad2 + (8,4) kernel)
    OW3P = (OW3 - 4) // 4 + 1        # pooling3 output width
    OUT = 8 * OW3P                   # flattened logits per element

    # ---- fold eval-mode BatchNorm into per-channel scale/shift ---------------
    def fold(g, be, m, v):
        s = g * lax.rsqrt(v + EPS)
        return s, be - m * s

    s1, t1 = fold(p["g1"], p["be1"], p["m1"], p["v1"])
    s2, t2 = fold(p["g2"], p["be2"], p["m2"], p["v2"])
    s3, t3 = fold(p["g3"], p["be3"], p["m3"], p["v3"])

    # ---- layer 1: conv1 weight, (bias | scale | shift) columns ----------------
    w1m = p["w1"].reshape(16, 64).astype(f32)
    c1 = jnp.stack([p["b1"], s1, t1], axis=1).astype(f32)             # (16, 3)

    # ---- layer 2: conv2 (2,32) as banded matmuls; ZeroPad2d((16,17,0,1)) folded
    t_i = jnp.arange(T)[:, None]
    j_i = jnp.arange(OW2)[None, :]
    dw_i = t_i - j_i + 16                       # kernel tap index for (t, j)
    valid2 = (dw_i >= 0) & (dw_i < 32)
    dw_c = jnp.clip(dw_i, 0, 31)
    bands = []
    for dh in range(2):
        w2d = p["w2"][:, 0, dh, :]                                     # (4, 32)
        band = jnp.where(valid2[None, :, :], w2d[:, dw_c], 0.0)        # (4, T, OW2)
        bands.append(jnp.transpose(band, (1, 0, 2)).reshape(T, 4 * OW2))
    m2 = jnp.stack(bands, axis=0).astype(f32)                          # (2, T, 4*OW2)
    d1up = jnp.eye(16, k=1, dtype=f32)          # row i <- row i+1 (bottom zero pad)
    p2rows = jnp.stack([jnp.repeat(p["b2"], OW2),
                        jnp.repeat(s2, OW2),
                        jnp.repeat(t2, OW2)], axis=0).astype(f32)      # (3, 4*OW2)

    # ---- pool2 (2x2 window, stride 4) stride-pick matrices (channel-blocked) --
    rcol = jnp.arange(4 * OW2)
    ccol = jnp.arange(4 * OW2P)
    pw2 = jnp.stack(
        [(((rcol // OW2)[:, None] == (ccol // OW2P)[None, :]) &
          ((rcol % OW2)[:, None] == 4 * (ccol % OW2P)[None, :] + dw)).astype(f32)
         for dw in range(2)], axis=0)                                  # (2, 4*OW2, 4*OW2P)
    ph2 = jnp.stack(
        [(jnp.arange(16)[None, :] == 4 * jnp.arange(4)[:, None] + dh).astype(f32)
         for dh in range(2)], axis=0)                                  # (2, 4, 16)

    # ---- channel-blocked columns -> channel-blocked rows (feeds conv3) --------
    lmat = jnp.stack(
        [(jnp.arange(16)[:, None] == ci * 4 + jnp.arange(4)[None, :]).astype(f32)
         for ci in range(4)], axis=0)                                  # (4, 16, 4)
    rmat = jnp.stack(
        [(jnp.arange(4 * OW2P)[:, None] ==
          ci * OW2P + jnp.arange(OW2P)[None, :]).astype(f32)
         for ci in range(4)], axis=0)                                  # (4, 4*OW2P, OW2P)

    # ---- layer 3: conv3 (8,4) as (co,i)x(ci,r) matmuls; ZeroPad2d((2,1,4,3)) folded
    oi = jnp.arange(16)
    co_g, i_g = (oi // 4)[:, None], (oi % 4)[:, None]
    ci_g, r_g = (oi // 4)[None, :], (oi % 4)[None, :]
    dh_g = r_g + 4 - i_g                                               # always in [1, 7]
    w3l = jnp.transpose(p["w3"][co_g, ci_g, dh_g, :], (2, 0, 1)).astype(f32)  # (4,16,16)
    s3m = jnp.stack(
        [(jnp.arange(OW2P)[:, None] ==
          jnp.arange(OW3)[None, :] + dw - 2).astype(f32)
         for dw in range(4)], axis=0)                                  # (4, OW2P, OW3)
    c3 = jnp.stack([jnp.repeat(p["b3"], 4), jnp.repeat(s3, 4),
                    jnp.repeat(t3, 4)], axis=1).astype(f32)            # (16, 3)

    # ---- pool3 ((2,4) window, stride (2,4)) pick matrices ----------------------
    p3w = jnp.stack(
        [(jnp.arange(OW3)[:, None] == 4 * jnp.arange(OW3P)[None, :] + dw).astype(f32)
         for dw in range(4)], axis=0)                                  # (4, OW3, OW3P)
    o8 = jnp.arange(8)
    p3h = jnp.stack(
        [(jnp.arange(16)[None, :] ==
          ((o8 // 2) * 4 + (o8 % 2) * 2 + dh)[:, None]).astype(f32)
         for dh in range(2)], axis=0)                                  # (2, 8, 16)

    consts = [w1m, c1, m2, d1up, p2rows, pw2, ph2, lmat, rmat, w3l, s3m, c3,
              p3w, p3h]

    def kernel(x_ref, w1_ref, c1_ref, m2_ref, d1_ref, p2_ref, pw2_ref, ph2_ref,
               l_ref, r_ref, w3l_ref, s3_ref, c3_ref, p3w_ref, p3h_ref, o_ref):
        def mm(a, b):
            return jnp.dot(a, b, preferred_element_type=jnp.float32)

        # constant loads, hoisted out of the per-element loop
        w1 = w1_ref[...]
        c1v = c1_ref[...]
        b1c, s1c, t1c = c1v[:, 0:1], c1v[:, 1:2], c1v[:, 2:3]
        m2a, m2b = m2_ref[0], m2_ref[1]
        d1 = d1_ref[...]
        p2v = p2_ref[...]
        b2r, s2r, t2r = p2v[0:1, :], p2v[1:2, :], p2v[2:3, :]
        pw0, pw1 = pw2_ref[0], pw2_ref[1]
        ph0, ph1 = ph2_ref[0], ph2_ref[1]
        c3v = c3_ref[...]
        b3c, s3c, t3c = c3v[:, 0:1], c3v[:, 1:2], c3v[:, 2:3]
        ph30, ph31 = p3h_ref[0], p3h_ref[1]

        for b in range(Bt):
            xb = x_ref[b]                                           # (64, T)
            # conv1 (1,64) + ELU + BN1: one MXU matmul over the channel axis
            a1 = _elu(mm(w1, xb) + b1c) * s1c + t1c                 # (16, T)
            # conv2 (2,32): pad1 folded into the band matrices; dh=1 handled by
            # a one-row shift-up (bottom zero pad) 0/1 matmul
            a1u = mm(d1, a1)                                        # (16, T)
            y2 = mm(a1, m2a) + mm(a1u, m2b) + b2r                   # (16, 4*OW2)
            a2 = _elu(y2) * s2r + t2r
            # MaxPool2d(2, stride 4) = max of stride-pick matmuls
            mw = jnp.maximum(mm(a2, pw0), mm(a2, pw1))              # (16, 4*OW2P)
            pool2 = jnp.maximum(mm(ph0, mw), mm(ph1, mw))           # (4, 4*OW2P)
            # channel-blocked columns -> channel-blocked rows
            p2f = mm(l_ref[0], mm(pool2, r_ref[0]))
            for ci in range(1, 4):
                p2f = p2f + mm(l_ref[ci], mm(pool2, r_ref[ci]))     # (16, OW2P)
            # conv3 (8,4): pad2 folded into the shift matrices / row mapping
            y3 = b3c + mm(w3l_ref[0], mm(p2f, s3_ref[0]))
            for dw in range(1, 4):
                y3 = y3 + mm(w3l_ref[dw], mm(p2f, s3_ref[dw]))      # (16, OW3)
            a3 = _elu(y3) * s3c + t3c
            # MaxPool2d((2,4))
            mw3 = mm(a3, p3w_ref[0])
            for dw in range(1, 4):
                mw3 = jnp.maximum(mw3, mm(a3, p3w_ref[dw]))         # (16, OW3P)
            pool3 = jnp.maximum(mm(ph30, mw3), mm(ph31, mw3))       # (8, OW3P)
            # flatten + LogSoftmax(dim=1); flatten order == row-major (co, p, q)
            gm = jnp.max(jnp.max(pool3, axis=1, keepdims=True),
                         axis=0, keepdims=True)
            se = jnp.sum(jnp.sum(jnp.exp(pool3 - gm), axis=1, keepdims=True),
                         axis=0, keepdims=True)
            o_ref[b] = (pool3 - gm - jnp.log(se)).astype(o_ref.dtype)

    def _const_spec(a):
        zeros = (0,) * a.ndim
        return pl.BlockSpec(a.shape, lambda i, z=zeros: z)

    flops_elem = 2 * (16 * 64 * T + 16 * 16 * T + 2 * 16 * T * 4 * OW2
                      + 2 * 16 * (4 * OW2) * (4 * OW2P) + 2 * 4 * 16 * 4 * OW2P
                      + 4 * (4 * 4 * OW2P * OW2P + 16 * 4 * OW2P)
                      + 4 * (16 * OW2P * OW3 + 16 * 16 * OW3)
                      + 4 * 16 * OW3 * OW3P + 2 * 8 * 16 * OW3P)
    cost = pl.CostEstimate(
        flops=int(B * flops_elem),
        transcendentals=int(B * (16 * 4 * OW2 + 16 * OW3 + 8 * OW3P)),
        bytes_accessed=int(4 * (x.size + B * 8 * OW3P
                                + sum(a.size for a in consts))))

    out = pl.pallas_call(
        kernel,
        grid=(B // Bt,),
        in_specs=[pl.BlockSpec((Bt, 64, T), lambda i: (i, 0, 0))]
                 + [_const_spec(a) for a in consts],
        out_specs=pl.BlockSpec((Bt, 8, OW3P), lambda i: (i, 0, 0)),
        out_shape=jax.ShapeDtypeStruct((B, 8, OW3P), f32),
        compiler_params=pltpu.CompilerParams(
            dimension_semantics=("parallel",)),
        cost_estimate=cost,
    )(x.astype(f32), *consts)

    # torch.flatten(x, start_dim=1): free reshape outside the kernel
    return out.reshape(B, OUT)


# ----------------------------------------------------------------------------
# Pure-JAX (XLA) reference of the PyTorch module in eval mode, for checking
# ----------------------------------------------------------------------------
def eegnet_reference(x, p):
    dn = ("NCHW", "OIHW", "NCHW")
    hp = lax.Precision.HIGHEST

    def bn(h, g, be, m, v):
        s = g * lax.rsqrt(v + EPS)
        return h * s[None, :, None, None] + (be - m * s)[None, :, None, None]

    B = x.shape[0]
    h = jnp.swapaxes(x, 1, 2)[:, None, :, :]                        # (B,1,T,64)
    h = lax.conv_general_dilated(h, p["w1"], (1, 1), "VALID",
                                 dimension_numbers=dn, precision=hp)
    h = bn(_elu(h + p["b1"][None, :, None, None]),
           p["g1"], p["be1"], p["m1"], p["v1"])
    h = jnp.transpose(h, (0, 3, 1, 2))                               # (B,1,16,T)
    h = jnp.pad(h, ((0, 0), (0, 0), (0, 1), (16, 17)))
    h = lax.conv_general_dilated(h, p["w2"], (1, 1), "VALID",
                                 dimension_numbers=dn, precision=hp)
    h = bn(_elu(h + p["b2"][None, :, None, None]),
           p["g2"], p["be2"], p["m2"], p["v2"])
    h = lax.reduce_window(h, -jnp.inf, lax.max, (1, 1, 2, 2), (1, 1, 4, 4), "VALID")
    h = jnp.pad(h, ((0, 0), (0, 0), (4, 3), (2, 1)))
    h = lax.conv_general_dilated(h, p["w3"], (1, 1), "VALID",
                                 dimension_numbers=dn, precision=hp)
    h = bn(_elu(h + p["b3"][None, :, None, None]),
           p["g3"], p["be3"], p["m3"], p["v3"])
    h = lax.reduce_window(h, -jnp.inf, lax.max, (1, 1, 2, 4), (1, 1, 2, 4), "VALID")
    return jax.nn.log_softmax(h.reshape(B, -1), axis=1)


# ----------------------------------------------------------------------------
# Parameters (deterministic synthetic init; not a checkpoint)
# ----------------------------------------------------------------------------
def init_params(key):
    ks = jax.random.split(key, 24)
    p = {}

    def uni(k, shape, scale):
        return (jax.random.uniform(k, shape, jnp.float32) * 2.0 - 1.0) * scale

    # conv1: Conv2d(1, 16, (1, 64))
    p["w1"] = uni(ks[0], (16, 1, 1, 64), 1.0 / math.sqrt(64))
    p["b1"] = uni(ks[1], (16,), 1.0 / math.sqrt(64))
    # conv2: Conv2d(1, 4, (2, 32))
    p["w2"] = uni(ks[2], (4, 1, 2, 32), 1.0 / math.sqrt(64))
    p["b2"] = uni(ks[3], (4,), 1.0 / math.sqrt(64))
    # conv3: Conv2d(4, 4, (8, 4))
    p["w3"] = uni(ks[4], (4, 4, 8, 4), 1.0 / math.sqrt(128))
    p["b3"] = uni(ks[5], (4,), 1.0 / math.sqrt(128))
    # BatchNorm (eval mode): gamma, beta, running_mean, running_var
    for idx, (name, c) in enumerate([("1", 16), ("2", 4), ("3", 4)]):
        base = 6 + idx * 4
        p["g" + name] = 0.5 + jax.random.uniform(ks[base], (c,), jnp.float32)
        p["be" + name] = 0.1 * jax.random.normal(ks[base + 1], (c,), jnp.float32)
        p["m" + name] = 0.1 * jax.random.normal(ks[base + 2], (c,), jnp.float32)
        p["v" + name] = 0.5 + jax.random.uniform(ks[base + 3], (c,), jnp.float32)
    # fc1 (Linear(1280, 2)) is unused in the PyTorch forward -> not materialized
    return p


# ----------------------------------------------------------------------------
if __name__ == "__main__":
    key = jax.random.PRNGKey(0)
    kx, kp, kx2 = jax.random.split(key, 3)

    # Small shapes consistent with the module: the channel dim must be 64
    # (conv1 kernel width / conv2 single input channel); the time dim is free.
    B, CH, T = 2, 64, 16
    x = jax.random.normal(kx, (B, CH, T), dtype=jnp.float32)
    params = init_params(kp)

    out = jax.block_until_ready(jax.jit(eegnet_forward)(x, params))
    ref = jax.block_until_ready(jax.jit(eegnet_reference)(x, params))
    assert out.shape == (B, 8), out.shape
    assert bool(jnp.all(jnp.isfinite(out)))
    # log-softmax rows should (approximately) exponentiate-sum to 1
    assert bool(jnp.allclose(jnp.sum(jnp.exp(out), axis=1), 1.0, atol=1e-4))
    # matches the pure-JAX/XLA eval-mode reference of the PyTorch module
    assert bool(jnp.allclose(out, ref, atol=3e-2, rtol=3e-2))

    # second config: explicit 2-element batch blocks over B=4 -> 2-step grid
    # (exercises the multi-step "parallel" pipeline path)
    B2 = 4
    x2 = jax.random.normal(kx2, (B2, CH, T), dtype=jnp.float32)
    fwd2 = jax.jit(lambda a, q: eegnet_forward(a, q, block_batch=2))
    out2 = jax.block_until_ready(fwd2(x2, params))
    ref2 = jax.block_until_ready(jax.jit(eegnet_reference)(x2, params))
    assert out2.shape == (B2, 8), out2.shape
    assert bool(jnp.allclose(out2, ref2, atol=3e-2, rtol=3e-2))

    print("KERNEL_OK")
</pallas_src>

<mosaic_0001>
module attributes {stable_mosaic.version = 11 : i64} {
  func.func @kernel(%arg0: i32, %arg1: memref<2x64x16xf32, #tpu.memory_space<vmem>>, %arg2: memref<16x64xf32, #tpu.memory_space<vmem>>, %arg3: memref<16x3xf32, #tpu.memory_space<vmem>>, %arg4: memref<2x16x72xf32, #tpu.memory_space<vmem>>, %arg5: memref<16x16xf32, #tpu.memory_space<vmem>>, %arg6: memref<3x72xf32, #tpu.memory_space<vmem>>, %arg7: memref<2x72x20xf32, #tpu.memory_space<vmem>>, %arg8: memref<2x4x16xf32, #tpu.memory_space<vmem>>, %arg9: memref<4x16x4xf32, #tpu.memory_space<vmem>>, %arg10: memref<4x20x5xf32, #tpu.memory_space<vmem>>, %arg11: memref<4x16x16xf32, #tpu.memory_space<vmem>>, %arg12: memref<4x5x5xf32, #tpu.memory_space<vmem>>, %arg13: memref<16x3xf32, #tpu.memory_space<vmem>>, %arg14: memref<4x5x1xf32, #tpu.memory_space<vmem>>, %arg15: memref<2x8x16xf32, #tpu.memory_space<vmem>>, %arg16: memref<2x8x1xf32, #tpu.memory_space<vmem>>) attributes {dimension_semantics = [#tpu.dimension_semantics<parallel>], iteration_bounds = array<i64: 1>, scalar_prefetch = 0 : i64, scratch_operands = 0 : i64, tpu.core_type = #tpu.core_type<tc>, window_params = [{transform_indices = @transform_0, window_bounds = array<i64: 2, 64, 16>}, {pipeline_mode = #tpu.pipeline_mode<synchronous>, transform_indices = @transform_1, window_bounds = array<i64: 16, 64>}, {pipeline_mode = #tpu.pipeline_mode<synchronous>, transform_indices = @transform_2, window_bounds = array<i64: 16, 3>}, {pipeline_mode = #tpu.pipeline_mode<synchronous>, transform_indices = @transform_3, window_bounds = array<i64: 2, 16, 72>}, {pipeline_mode = #tpu.pipeline_mode<synchronous>, transform_indices = @transform_4, window_bounds = array<i64: 16, 16>}, {pipeline_mode = #tpu.pipeline_mode<synchronous>, transform_indices = @transform_5, window_bounds = array<i64: 3, 72>}, {pipeline_mode = #tpu.pipeline_mode<synchronous>, transform_indices = @transform_6, window_bounds = array<i64: 2, 72, 20>}, {pipeline_mode = #tpu.pipeline_mode<synchronous>, transform_indices = @transform_7, window_bounds = array<i64: 2, 4, 16>}, {pipeline_mode = #tpu.pipeline_mode<synchronous>, transform_indices = @transform_8, window_bounds = array<i64: 4, 16, 4>}, {pipeline_mode = #tpu.pipeline_mode<synchronous>, transform_indices = @transform_9, window_bounds = array<i64: 4, 20, 5>}, {pipeline_mode = #tpu.pipeline_mode<synchronous>, transform_indices = @transform_10, window_bounds = array<i64: 4, 16, 16>}, {pipeline_mode = #tpu.pipeline_mode<synchronous>, transform_indices = @transform_11, window_bounds = array<i64: 4, 5, 5>}, {pipeline_mode = #tpu.pipeline_mode<synchronous>, transform_indices = @transform_12, window_bounds = array<i64: 16, 3>}, {pipeline_mode = #tpu.pipeline_mode<synchronous>, transform_indices = @transform_13, window_bounds = array<i64: 4, 5, 1>}, {pipeline_mode = #tpu.pipeline_mode<synchronous>, transform_indices = @transform_14, window_bounds = array<i64: 2, 8, 16>}, {transform_indices = @transform_15, window_bounds = array<i64: 2, 8, 1>}]} {
    %c0 = arith.constant 0 : index
    %c0_0 = arith.constant 0 : index
    %0 = vector.load %arg2[%c0, %c0_0] : memref<16x64xf32, #tpu.memory_space<vmem>>, vector<16x64xf32>
    %c0_1 = arith.constant 0 : index
    %c0_2 = arith.constant 0 : index
    %1 = vector.load %arg3[%c0_1, %c0_2] : memref<16x3xf32, #tpu.memory_space<vmem>>, vector<16x3xf32>
    %2 = vector.extract_strided_slice %1 {offsets = [0, 0], sizes = [16, 1], strides = [1, 1]} : vector<16x3xf32> to vector<16x1xf32>
    %3 = vector.extract_strided_slice %1 {offsets = [0, 1], sizes = [16, 1], strides = [1, 1]} : vector<16x3xf32> to vector<16x1xf32>
    %4 = vector.extract_strided_slice %1 {offsets = [0, 2], sizes = [16, 1], strides = [1, 1]} : vector<16x3xf32> to vector<16x1xf32>
    %c0_3 = arith.constant 0 : index
    %c0_4 = arith.constant 0 : index
    %c0_5 = arith.constant 0 : index
    %5 = vector.load %arg4[%c0_3, %c0_4, %c0_5] : memref<2x16x72xf32, #tpu.memory_space<vmem>>, vector<1x16x72xf32>
    %6 = vector.shape_cast %5 : vector<1x16x72xf32> to vector<16x72xf32>
    %c1 = arith.constant 1 : index
    %c0_6 = arith.constant 0 : index
    %c0_7 = arith.constant 0 : index
    %7 = vector.load %arg4[%c1, %c0_6, %c0_7] : memref<2x16x72xf32, #tpu.memory_space<vmem>>, vector<1x16x72xf32>
    %8 = vector.shape_cast %7 : vector<1x16x72xf32> to vector<16x72xf32>
    %c0_8 = arith.constant 0 : index
    %c0_9 = arith.constant 0 : index
    %9 = vector.load %arg5[%c0_8, %c0_9] : memref<16x16xf32, #tpu.memory_space<vmem>>, vector<16x16xf32>
    %c0_10 = arith.constant 0 : index
    %c0_11 = arith.constant 0 : index
    %10 = vector.load %arg6[%c0_10, %c0_11] : memref<3x72xf32, #tpu.memory_space<vmem>>, vector<3x72xf32>
    %11 = vector.extract_strided_slice %10 {offsets = [0, 0], sizes = [1, 72], strides = [1, 1]} : vector<3x72xf32> to vector<1x72xf32>
    %12 = vector.extract_strided_slice %10 {offsets = [1, 0], sizes = [1, 72], strides = [1, 1]} : vector<3x72xf32> to vector<1x72xf32>
    %13 = vector.extract_strided_slice %10 {offsets = [2, 0], sizes = [1, 72], strides = [1, 1]} : vector<3x72xf32> to vector<1x72xf32>
    %c0_12 = arith.constant 0 : index
    %c0_13 = arith.constant 0 : index
    %c0_14 = arith.constant 0 : index
    %14 = vector.load %arg7[%c0_12, %c0_13, %c0_14] : memref<2x72x20xf32, #tpu.memory_space<vmem>>, vector<1x72x20xf32>
    %15 = vector.shape_cast %14 : vector<1x72x20xf32> to vector<72x20xf32>
    %c1_15 = arith.constant 1 : index
    %c0_16 = arith.constant 0 : index
    %c0_17 = arith.constant 0 : index
    %16 = vector.load %arg7[%c1_15, %c0_16, %c0_17] : memref<2x72x20xf32, #tpu.memory_space<vmem>>, vector<1x72x20xf32>
    %17 = vector.shape_cast %16 : vector<1x72x20xf32> to vector<72x20xf32>
    %c0_18 = arith.constant 0 : index
    %c0_19 = arith.constant 0 : index
    %c0_20 = arith.constant 0 : index
    %18 = vector.load %arg8[%c0_18, %c0_19, %c0_20] : memref<2x4x16xf32, #tpu.memory_space<vmem>>, vector<1x4x16xf32>
    %19 = vector.shape_cast %18 : vector<1x4x16xf32> to vector<4x16xf32>
    %c1_21 = arith.constant 1 : index
    %c0_22 = arith.constant 0 : index
    %c0_23 = arith.constant 0 : index
    %20 = vector.load %arg8[%c1_21, %c0_22, %c0_23] : memref<2x4x16xf32, #tpu.memory_space<vmem>>, vector<1x4x16xf32>
    %21 = vector.shape_cast %20 : vector<1x4x16xf32> to vector<4x16xf32>
    %c0_24 = arith.constant 0 : index
    %c0_25 = arith.constant 0 : index
    %22 = vector.load %arg13[%c0_24, %c0_25] : memref<16x3xf32, #tpu.memory_space<vmem>>, vector<16x3xf32>
    %23 = vector.extract_strided_slice %22 {offsets = [0, 0], sizes = [16, 1], strides = [1, 1]} : vector<16x3xf32> to vector<16x1xf32>
    %24 = vector.extract_strided_slice %22 {offsets = [0, 1], sizes = [16, 1], strides = [1, 1]} : vector<16x3xf32> to vector<16x1xf32>
    %25 = vector.extract_strided_slice %22 {offsets = [0, 2], sizes = [16, 1], strides = [1, 1]} : vector<16x3xf32> to vector<16x1xf32>
    %c0_26 = arith.constant 0 : index
    %c0_27 = arith.constant 0 : index
    %c0_28 = arith.constant 0 : index
    %26 = vector.load %arg15[%c0_26, %c0_27, %c0_28] : memref<2x8x16xf32, #tpu.memory_space<vmem>>, vector<1x8x16xf32>
    %27 = vector.shape_cast %26 : vector<1x8x16xf32> to vector<8x16xf32>
    %c1_29 = arith.constant 1 : index
    %c0_30 = arith.constant 0 : index
    %c0_31 = arith.constant 0 : index
    %28 = vector.load %arg15[%c1_29, %c0_30, %c0_31] : memref<2x8x16xf32, #tpu.memory_space<vmem>>, vector<1x8x16xf32>
    %29 = vector.shape_cast %28 : vector<1x8x16xf32> to vector<8x16xf32>
    %c0_32 = arith.constant 0 : index
    %c0_33 = arith.constant 0 : index
    %c0_34 = arith.constant 0 : index
    %30 = vector.load %arg1[%c0_32, %c0_33, %c0_34] : memref<2x64x16xf32, #tpu.memory_space<vmem>>, vector<1x64x16xf32>
    %31 = vector.shape_cast %30 : vector<1x64x16xf32> to vector<64x16xf32>
    %cst = arith.constant dense<0.000000e+00> : vector<16x16xf32>
    %32 = tpu.matmul %0, %31, %cst {dimension_numbers = #tpu.dot_dimension_numbers<[1], [0], [0], [1], [0, 0, 1, 1], [], []>} : vector<16x64xf32>, vector<64x16xf32>, vector<16x16xf32> -> vector<16x16xf32>
    %33 = vector.broadcast %2 : vector<16x1xf32> to vector<16x16xf32>
    %34 = arith.addf %32, %33 : vector<16x16xf32>
    %cst_35 = arith.constant 0.000000e+00 : f32
    %35 = vector.broadcast %cst_35 : f32 to vector<16x16xf32>
    %36 = arith.cmpf ogt, %34, %35 : vector<16x16xf32>
    %cst_36 = arith.constant 0.000000e+00 : f32
    %37 = vector.broadcast %cst_36 : f32 to vector<16x16xf32>
    %38 = arith.minimumf %34, %37 : vector<16x16xf32>
    %39 = math.exp %38 : vector<16x16xf32>
    %cst_37 = arith.constant 1.000000e+00 : f32
    %40 = vector.broadcast %cst_37 : f32 to vector<16x16xf32>
    %41 = arith.subf %39, %40 : vector<16x16xf32>
    %42 = arith.select %36, %34, %41 : vector<16x16xi1>, vector<16x16xf32>
    %43 = vector.broadcast %3 : vector<16x1xf32> to vector<16x16xf32>
    %44 = arith.mulf %42, %43 : vector<16x16xf32>
    %45 = vector.broadcast %4 : vector<16x1xf32> to vector<16x16xf32>
    %46 = arith.addf %44, %45 : vector<16x16xf32>
    %cst_38 = arith.constant dense<0.000000e+00> : vector<16x16xf32>
    %47 = tpu.matmul %9, %46, %cst_38 {dimension_numbers = #tpu.dot_dimension_numbers<[1], [0], [0], [1], [0, 0, 1, 1], [], []>} : vector<16x16xf32>, vector<16x16xf32>, vector<16x16xf32> -> vector<16x16xf32>
    %cst_39 = arith.constant dense<0.000000e+00> : vector<16x72xf32>
    %48 = tpu.matmul %46, %6, %cst_39 {dimension_numbers = #tpu.dot_dimension_numbers<[1], [0], [0], [1], [0, 0, 1, 1], [], []>} : vector<16x16xf32>, vector<16x72xf32>, vector<16x72xf32> -> vector<16x72xf32>
    %cst_40 = arith.constant dense<0.000000e+00> : vector<16x72xf32>
    %49 = tpu.matmul %47, %8, %cst_40 {dimension_numbers = #tpu.dot_dimension_numbers<[1], [0], [0], [1], [0, 0, 1, 1], [], []>} : vector<16x16xf32>, vector<16x72xf32>, vector<16x72xf32> -> vector<16x72xf32>
    %50 = arith.addf %48, %49 : vector<16x72xf32>
    %51 = vector.broadcast %11 : vector<1x72xf32> to vector<16x72xf32>
    %52 = arith.addf %50, %51 : vector<16x72xf32>
    %cst_41 = arith.constant 0.000000e+00 : f32
    %53 = vector.broadcast %cst_41 : f32 to vector<16x72xf32>
    %54 = arith.cmpf ogt, %52, %53 : vector<16x72xf32>
    %cst_42 = arith.constant 0.000000e+00 : f32
    %55 = vector.broadcast %cst_42 : f32 to vector<16x72xf32>
    %56 = arith.minimumf %52, %55 : vector<16x72xf32>
    %57 = math.exp %56 : vector<16x72xf32>
    %cst_43 = arith.constant 1.000000e+00 : f32
    %58 = vector.broadcast %cst_43 : f32 to vector<16x72xf32>
    %59 = arith.subf %57, %58 : vector<16x72xf32>
    %60 = arith.select %54, %52, %59 : vector<16x72xi1>, vector<16x72xf32>
    %61 = vector.broadcast %12 : vector<1x72xf32> to vector<16x72xf32>
    %62 = arith.mulf %60, %61 : vector<16x72xf32>
    %63 = vector.broadcast %13 : vector<1x72xf32> to vector<16x72xf32>
    %64 = arith.addf %62, %63 : vector<16x72xf32>
    %cst_44 = arith.constant dense<0.000000e+00> : vector<16x20xf32>
    %65 = tpu.matmul %64, %15, %cst_44 {dimension_numbers = #tpu.dot_dimension_numbers<[1], [0], [0], [1], [0, 0, 1, 1], [], []>} : vector<16x72xf32>, vector<72x20xf32>, vector<16x20xf32> -> vector<16x20xf32>
    %cst_45 = arith.constant dense<0.000000e+00> : vector<16x20xf32>
    %66 = tpu.matmul %64, %17, %cst_45 {dimension_numbers = #tpu.dot_dimension_numbers<[1], [0], [0], [1], [0, 0, 1, 1], [], []>} : vector<16x72xf32>, vector<72x20xf32>, vector<16x20xf32> -> vector<16x20xf32>
    %67 = arith.maximumf %65, %66 : vector<16x20xf32>
    %cst_46 = arith.constant dense<0.000000e+00> : vector<4x20xf32>
    %68 = tpu.matmul %19, %67, %cst_46 {dimension_numbers = #tpu.dot_dimension_numbers<[1], [0], [0], [1], [0, 0, 1, 1], [], []>} : vector<4x16xf32>, vector<16x20xf32>, vector<4x20xf32> -> vector<4x20xf32>
    %cst_47 = arith.constant dense<0.000000e+00> : vector<4x20xf32>
    %69 = tpu.matmul %21, %67, %cst_47 {dimension_numbers = #tpu.dot_dimension_numbers<[1], [0], [0], [1], [0, 0, 1, 1], [], []>} : vector<4x16xf32>, vector<16x20xf32>, vector<4x20xf32> -> vector<4x20xf32>
    %70 = arith.maximumf %68, %69 : vector<4x20xf32>
    %c0_48 = arith.constant 0 : index
    %c0_49 = arith.constant 0 : index
    %c0_50 = arith.constant 0 : index
    %71 = vector.load %arg9[%c0_48, %c0_49, %c0_50] : memref<4x16x4xf32, #tpu.memory_space<vmem>>, vector<1x16x4xf32>
    %72 = vector.shape_cast %71 : vector<1x16x4xf32> to vector<16x4xf32>
    %c0_51 = arith.constant 0 : index
    %c0_52 = arith.constant 0 : index
    %c0_53 = arith.constant 0 : index
    %73 = vector.load %arg10[%c0_51, %c0_52, %c0_53] : memref<4x20x5xf32, #tpu.memory_space<vmem>>, vector<1x20x5xf32>
    %74 = vector.shape_cast %73 : vector<1x20x5xf32> to vector<20x5xf32>
    %cst_54 = arith.constant dense<0.000000e+00> : vector<4x5xf32>
    %75 = tpu.matmul %70, %74, %cst_54 {dimension_numbers = #tpu.dot_dimension_numbers<[1], [0], [0], [1], [0, 0, 1, 1], [], []>} : vector<4x20xf32>, vector<20x5xf32>, vector<4x5xf32> -> vector<4x5xf32>
    %cst_55 = arith.constant dense<0.000000e+00> : vector<16x5xf32>
    %76 = tpu.matmul %72, %75, %cst_55 {dimension_numbers = #tpu.dot_dimension_numbers<[1], [0], [0], [1], [0, 0, 1, 1], [], []>} : vector<16x4xf32>, vector<4x5xf32>, vector<16x5xf32> -> vector<16x5xf32>
    %c1_56 = arith.constant 1 : index
    %c0_57 = arith.constant 0 : index
    %c0_58 = arith.constant 0 : index
    %77 = vector.load %arg9[%c1_56, %c0_57, %c0_58] : memref<4x16x4xf32, #tpu.memory_space<vmem>>, vector<1x16x4xf32>
    %78 = vector.shape_cast %77 : vector<1x16x4xf32> to vector<16x4xf32>
    %c1_59 = arith.constant 1 : index
    %c0_60 = arith.constant 0 : index
    %c0_61 = arith.constant 0 : index
    %79 = vector.load %arg10[%c1_59, %c0_60, %c0_61] : memref<4x20x5xf32, #tpu.memory_space<vmem>>, vector<1x20x5xf32>
    %80 = vector.shape_cast %79 : vector<1x20x5xf32> to vector<20x5xf32>
    %cst_62 = arith.constant dense<0.000000e+00> : vector<4x5xf32>
    %81 = tpu.matmul %70, %80, %cst_62 {dimension_numbers = #tpu.dot_dimension_numbers<[1], [0], [0], [1], [0, 0, 1, 1], [], []>} : vector<4x20xf32>, vector<20x5xf32>, vector<4x5xf32> -> vector<4x5xf32>
    %cst_63 = arith.constant dense<0.000000e+00> : vector<16x5xf32>
    %82 = tpu.matmul %78, %81, %cst_63 {dimension_numbers = #tpu.dot_dimension_numbers<[1], [0], [0], [1], [0, 0, 1, 1], [], []>} : vector<16x4xf32>, vector<4x5xf32>, vector<16x5xf32> -> vector<16x5xf32>
    %83 = arith.addf %76, %82 : vector<16x5xf32>
    %c2 = arith.constant 2 : index
    %c0_64 = arith.constant 0 : index
    %c0_65 = arith.constant 0 : index
    %84 = vector.load %arg9[%c2, %c0_64, %c0_65] : memref<4x16x4xf32, #tpu.memory_space<vmem>>, vector<1x16x4xf32>
    %85 = vector.shape_cast %84 : vector<1x16x4xf32> to vector<16x4xf32>
    %c2_66 = arith.constant 2 : index
    %c0_67 = arith.constant 0 : index
    %c0_68 = arith.constant 0 : index
    %86 = vector.load %arg10[%c2_66, %c0_67, %c0_68] : memref<4x20x5xf32, #tpu.memory_space<vmem>>, vector<1x20x5xf32>
    %87 = vector.shape_cast %86 : vector<1x20x5xf32> to vector<20x5xf32>
    %cst_69 = arith.constant dense<0.000000e+00> : vector<4x5xf32>
    %88 = tpu.matmul %70, %87, %cst_69 {dimension_numbers = #tpu.dot_dimension_numbers<[1], [0], [0], [1], [0, 0, 1, 1], [], []>} : vector<4x20xf32>, vector<20x5xf32>, vector<4x5xf32> -> vector<4x5xf32>
    %cst_70 = arith.constant dense<0.000000e+00> : vector<16x5xf32>
    %89 = tpu.matmul %85, %88, %cst_70 {dimension_numbers = #tpu.dot_dimension_numbers<[1], [0], [0], [1], [0, 0, 1, 1], [], []>} : vector<16x4xf32>, vector<4x5xf32>, vector<16x5xf32> -> vector<16x5xf32>
    %90 = arith.addf %83, %89 : vector<16x5xf32>
    %c3 = arith.constant 3 : index
    %c0_71 = arith.constant 0 : index
    %c0_72 = arith.constant 0 : index
    %91 = vector.load %arg9[%c3, %c0_71, %c0_72] : memref<4x16x4xf32, #tpu.memory_space<vmem>>, vector<1x16x4xf32>
    %92 = vector.shape_cast %91 : vector<1x16x4xf32> to vector<16x4xf32>
    %c3_73 = arith.constant 3 : index
    %c0_74 = arith.constant 0 : index
    %c0_75 = arith.constant 0 : index
    %93 = vector.load %arg10[%c3_73, %c0_74, %c0_75] : memref<4x20x5xf32, #tpu.memory_space<vmem>>, vector<1x20x5xf32>
    %94 = vector.shape_cast %93 : vector<1x20x5xf32> to vector<20x5xf32>
    %cst_76 = arith.constant dense<0.000000e+00> : vector<4x5xf32>
    %95 = tpu.matmul %70, %94, %cst_76 {dimension_numbers = #tpu.dot_dimension_numbers<[1], [0], [0], [1], [0, 0, 1, 1], [], []>} : vector<4x20xf32>, vector<20x5xf32>, vector<4x5xf32> -> vector<4x5xf32>
    %cst_77 = arith.constant dense<0.000000e+00> : vector<16x5xf32>
    %96 = tpu.matmul %92, %95, %cst_77 {dimension_numbers = #tpu.dot_dimension_numbers<[1], [0], [0], [1], [0, 0, 1, 1], [], []>} : vector<16x4xf32>, vector<4x5xf32>, vector<16x5xf32> -> vector<16x5xf32>
    %97 = arith.addf %90, %96 : vector<16x5xf32>
    %c0_78 = arith.constant 0 : index
    %c0_79 = arith.constant 0 : index
    %c0_80 = arith.constant 0 : index
    %98 = vector.load %arg11[%c0_78, %c0_79, %c0_80] : memref<4x16x16xf32, #tpu.memory_space<vmem>>, vector<1x16x16xf32>
    %99 = vector.shape_cast %98 : vector<1x16x16xf32> to vector<16x16xf32>
    %c0_81 = arith.constant 0 : index
    %c0_82 = arith.constant 0 : index
    %c0_83 = arith.constant 0 : index
    %100 = vector.load %arg12[%c0_81, %c0_82, %c0_83] : memref<4x5x5xf32, #tpu.memory_space<vmem>>, vector<1x5x5xf32>
    %101 = vector.shape_cast %100 : vector<1x5x5xf32> to vector<5x5xf32>
    %cst_84 = arith.constant dense<0.000000e+00> : vector<16x5xf32>
    %102 = tpu.matmul %97, %101, %cst_84 {dimension_numbers = #tpu.dot_dimension_numbers<[1], [0], [0], [1], [0, 0, 1, 1], [], []>} : vector<16x5xf32>, vector<5x5xf32>, vector<16x5xf32> -> vector<16x5xf32>
    %cst_85 = arith.constant dense<0.000000e+00> : vector<16x5xf32>
    %103 = tpu.matmul %99, %102, %cst_85 {dimension_numbers = #tpu.dot_dimension_numbers<[1], [0], [0], [1], [0, 0, 1, 1], [], []>} : vector<16x16xf32>, vector<16x5xf32>, vector<16x5xf32> -> vector<16x5xf32>
    %104 = vector.broadcast %23 : vector<16x1xf32> to vector<16x5xf32>
    %105 = arith.addf %104, %103 : vector<16x5xf32>
    %c1_86 = arith.constant 1 : index
    %c0_87 = arith.constant 0 : index
    %c0_88 = arith.constant 0 : index
    %106 = vector.load %arg11[%c1_86, %c0_87, %c0_88] : memref<4x16x16xf32, #tpu.memory_space<vmem>>, vector<1x16x16xf32>
    %107 = vector.shape_cast %106 : vector<1x16x16xf32> to vector<16x16xf32>
    %c1_89 = arith.constant 1 : index
    %c0_90 = arith.constant 0 : index
    %c0_91 = arith.constant 0 : index
    %108 = vector.load %arg12[%c1_89, %c0_90, %c0_91] : memref<4x5x5xf32, #tpu.memory_space<vmem>>, vector<1x5x5xf32>
    %109 = vector.shape_cast %108 : vector<1x5x5xf32> to vector<5x5xf32>
    %cst_92 = arith.constant dense<0.000000e+00> : vector<16x5xf32>
    %110 = tpu.matmul %97, %109, %cst_92 {dimension_numbers = #tpu.dot_dimension_numbers<[1], [0], [0], [1], [0, 0, 1, 1], [], []>} : vector<16x5xf32>, vector<5x5xf32>, vector<16x5xf32> -> vector<16x5xf32>
    %cst_93 = arith.constant dense<0.000000e+00> : vector<16x5xf32>
    %111 = tpu.matmul %107, %110, %cst_93 {dimension_numbers = #tpu.dot_dimension_numbers<[1], [0], [0], [1], [0, 0, 1, 1], [], []>} : vector<16x16xf32>, vector<16x5xf32>, vector<16x5xf32> -> vector<16x5xf32>
    %112 = arith.addf %105, %111 : vector<16x5xf32>
    %c2_94 = arith.constant 2 : index
    %c0_95 = arith.constant 0 : index
    %c0_96 = arith.constant 0 : index
    %113 = vector.load %arg11[%c2_94, %c0_95, %c0_96] : memref<4x16x16xf32, #tpu.memory_space<vmem>>, vector<1x16x16xf32>
    %114 = vector.shape_cast %113 : vector<1x16x16xf32> to vector<16x16xf32>
    %c2_97 = arith.constant 2 : index
    %c0_98 = arith.constant 0 : index
    %c0_99 = arith.constant 0 : index
    %115 = vector.load %arg12[%c2_97, %c0_98, %c0_99] : memref<4x5x5xf32, #tpu.memory_space<vmem>>, vector<1x5x5xf32>
    %116 = vector.shape_cast %115 : vector<1x5x5xf32> to vector<5x5xf32>
    %cst_100 = arith.constant dense<0.000000e+00> : vector<16x5xf32>
    %117 = tpu.matmul %97, %116, %cst_100 {dimension_numbers = #tpu.dot_dimension_numbers<[1], [0], [0], [1], [0, 0, 1, 1], [], []>} : vector<16x5xf32>, vector<5x5xf32>, vector<16x5xf32> -> vector<16x5xf32>
    %cst_101 = arith.constant dense<0.000000e+00> : vector<16x5xf32>
    %118 = tpu.matmul %114, %117, %cst_101 {dimension_numbers = #tpu.dot_dimension_numbers<[1], [0], [0], [1], [0, 0, 1, 1], [], []>} : vector<16x16xf32>, vector<16x5xf32>, vector<16x5xf32> -> vector<16x5xf32>
    %119 = arith.addf %112, %118 : vector<16x5xf32>
    %c3_102 = arith.constant 3 : index
    %c0_103 = arith.constant 0 : index
    %c0_104 = arith.constant 0 : index
    %120 = vector.load %arg11[%c3_102, %c0_103, %c0_104] : memref<4x16x16xf32, #tpu.memory_space<vmem>>, vector<1x16x16xf32>
    %121 = vector.shape_cast %120 : vector<1x16x16xf32> to vector<16x16xf32>
    %c3_105 = arith.constant 3 : index
    %c0_106 = arith.constant 0 : index
    %c0_107 = arith.constant 0 : index
    %122 = vector.load %arg12[%c3_105, %c0_106, %c0_107] : memref<4x5x5xf32, #tpu.memory_space<vmem>>, vector<1x5x5xf32>
    %123 = vector.shape_cast %122 : vector<1x5x5xf32> to vector<5x5xf32>
    %cst_108 = arith.constant dense<0.000000e+00> : vector<16x5xf32>
    %124 = tpu.matmul %97, %123, %cst_108 {dimension_numbers = #tpu.dot_dimension_numbers<[1], [0], [0], [1], [0, 0, 1, 1], [], []>} : vector<16x5xf32>, vector<5x5xf32>, vector<16x5xf32> -> vector<16x5xf32>
    %cst_109 = arith.constant dense<0.000000e+00> : vector<16x5xf32>
    %125 = tpu.matmul %121, %124, %cst_109 {dimension_numbers = #tpu.dot_dimension_numbers<[1], [0], [0], [1], [0, 0, 1, 1], [], []>} : vector<16x16xf32>, vector<16x5xf32>, vector<16x5xf32> -> vector<16x5xf32>
    %126 = arith.addf %119, %125 : vector<16x5xf32>
    %cst_110 = arith.constant 0.000000e+00 : f32
    %127 = vector.broadcast %cst_110 : f32 to vector<16x5xf32>
    %128 = arith.cmpf ogt, %126, %127 : vector<16x5xf32>
    %cst_111 = arith.constant 0.000000e+00 : f32
    %129 = vector.broadcast %cst_111 : f32 to vector<16x5xf32>
    %130 = arith.minimumf %126, %129 : vector<16x5xf32>
    %131 = math.exp %130 : vector<16x5xf32>
    %cst_112 = arith.constant 1.000000e+00 : f32
    %132 = vector.broadcast %cst_112 : f32 to vector<16x5xf32>
    %133 = arith.subf %131, %132 : vector<16x5xf32>
    %134 = arith.select %128, %126, %133 : vector<16x5xi1>, vector<16x5xf32>
    %135 = vector.broadcast %24 : vector<16x1xf32> to vector<16x5xf32>
    %136 = arith.mulf %134, %135 : vector<16x5xf32>
    %137 = vector.broadcast %25 : vector<16x1xf32> to vector<16x5xf32>
    %138 = arith.addf %136, %137 : vector<16x5xf32>
    %c0_113 = arith.constant 0 : index
    %c0_114 = arith.constant 0 : index
    %c0_115 = arith.constant 0 : index
    %139 = vector.load %arg14[%c0_113, %c0_114, %c0_115] : memref<4x5x1xf32, #tpu.memory_space<vmem>>, vector<1x5x1xf32>
    %140 = vector.shape_cast %139 : vector<1x5x1xf32> to vector<5x1xf32>
    %cst_116 = arith.constant dense<0.000000e+00> : vector<16x1xf32>
    %141 = tpu.matmul %138, %140, %cst_116 {dimension_numbers = #tpu.dot_dimension_numbers<[1], [0], [0], [1], [0, 0, 1, 1], [], []>} : vector<16x5xf32>, vector<5x1xf32>, vector<16x1xf32> -> vector<16x1xf32>
    %c1_117 = arith.constant 1 : index
    %c0_118 = arith.constant 0 : index
    %c0_119 = arith.constant 0 : index
    %142 = vector.load %arg14[%c1_117, %c0_118, %c0_119] : memref<4x5x1xf32, #tpu.memory_space<vmem>>, vector<1x5x1xf32>
    %143 = vector.shape_cast %142 : vector<1x5x1xf32> to vector<5x1xf32>
    %cst_120 = arith.constant dense<0.000000e+00> : vector<16x1xf32>
    %144 = tpu.matmul %138, %143, %cst_120 {dimension_numbers = #tpu.dot_dimension_numbers<[1], [0], [0], [1], [0, 0, 1, 1], [], []>} : vector<16x5xf32>, vector<5x1xf32>, vector<16x1xf32> -> vector<16x1xf32>
    %145 = arith.maximumf %141, %144 : vector<16x1xf32>
    %c2_121 = arith.constant 2 : index
    %c0_122 = arith.constant 0 : index
    %c0_123 = arith.constant 0 : index
    %146 = vector.load %arg14[%c2_121, %c0_122, %c0_123] : memref<4x5x1xf32, #tpu.memory_space<vmem>>, vector<1x5x1xf32>
    %147 = vector.shape_cast %146 : vector<1x5x1xf32> to vector<5x1xf32>
    %cst_124 = arith.constant dense<0.000000e+00> : vector<16x1xf32>
    %148 = tpu.matmul %138, %147, %cst_124 {dimension_numbers = #tpu.dot_dimension_numbers<[1], [0], [0], [1], [0, 0, 1, 1], [], []>} : vector<16x5xf32>, vector<5x1xf32>, vector<16x1xf32> -> vector<16x1xf32>
    %149 = arith.maximumf %145, %148 : vector<16x1xf32>
    %c3_125 = arith.constant 3 : index
    %c0_126 = arith.constant 0 : index
    %c0_127 = arith.constant 0 : index
    %150 = vector.load %arg14[%c3_125, %c0_126, %c0_127] : memref<4x5x1xf32, #tpu.memory_space<vmem>>, vector<1x5x1xf32>
    %151 = vector.shape_cast %150 : vector<1x5x1xf32> to vector<5x1xf32>
    %cst_128 = arith.constant dense<0.000000e+00> : vector<16x1xf32>
    %152 = tpu.matmul %138, %151, %cst_128 {dimension_numbers = #tpu.dot_dimension_numbers<[1], [0], [0], [1], [0, 0, 1, 1], [], []>} : vector<16x5xf32>, vector<5x1xf32>, vector<16x1xf32> -> vector<16x1xf32>
    %153 = arith.maximumf %149, %152 : vector<16x1xf32>
    %cst_129 = arith.constant dense<0.000000e+00> : vector<8x1xf32>
    %154 = tpu.matmul %27, %153, %cst_129 {dimension_numbers = #tpu.dot_dimension_numbers<[1], [0], [0], [1], [0, 0, 1, 1], [], []>} : vector<8x16xf32>, vector<16x1xf32>, vector<8x1xf32> -> vector<8x1xf32>
    %cst_130 = arith.constant dense<0.000000e+00> : vector<8x1xf32>
    %155 = tpu.matmul %29, %153, %cst_130 {dimension_numbers = #tpu.dot_dimension_numbers<[1], [0], [0], [1], [0, 0, 1, 1], [], []>} : vector<8x16xf32>, vector<16x1xf32>, vector<8x1xf32> -> vector<8x1xf32>
    %156 = arith.maximumf %154, %155 : vector<8x1xf32>
    %cst_131 = arith.constant dense<0xFF800000> : vector<8xf32>
    %157 = vector.multi_reduction <maximumf>, %156, %cst_131 [1] : vector<8x1xf32> to vector<8xf32>
    %158 = vector.shape_cast %157 : vector<8xf32> to vector<8x1xf32>
    %cst_132 = arith.constant dense<0xFF800000> : vector<1xf32>
    %159 = vector.multi_reduction <maximumf>, %158, %cst_132 [0] : vector<8x1xf32> to vector<1xf32>
    %160 = vector.shape_cast %159 : vector<1xf32> to vector<1x1xf32>
    %161 = vector.broadcast %160 : vector<1x1xf32> to vector<8x1xf32>
    %162 = arith.subf %156, %161 : vector<8x1xf32>
    %163 = math.exp %162 : vector<8x1xf32>
    %cst_133 = arith.constant dense<0.000000e+00> : vector<8xf32>
    %164 = vector.multi_reduction <add>, %163, %cst_133 [1] : vector<8x1xf32> to vector<8xf32>
    %165 = vector.shape_cast %164 : vector<8xf32> to vector<8x1xf32>
    %cst_134 = arith.constant dense<0.000000e+00> : vector<1xf32>
    %166 = vector.multi_reduction <add>, %165, %cst_134 [0] : vector<8x1xf32> to vector<1xf32>
    %167 = vector.shape_cast %166 : vector<1xf32> to vector<1x1xf32>
    %168 = vector.broadcast %160 : vector<1x1xf32> to vector<8x1xf32>
    %169 = arith.subf %156, %168 : vector<8x1xf32>
    %170 = math.log %167 : vector<1x1xf32>
    %171 = vector.broadcast %170 : vector<1x1xf32> to vector<8x1xf32>
    %172 = arith.subf %169, %171 : vector<8x1xf32>
    %c0_135 = arith.constant 0 : index
    %c0_136 = arith.constant 0 : index
    %c0_137 = arith.constant 0 : index
    %173 = vector.load %arg16[%c0_135, %c0_136, %c0_137] : memref<2x8x1xf32, #tpu.memory_space<vmem>>, vector<1x8x1xf32>
    %174 = vector.shape_cast %173 : vector<1x8x1xf32> to vector<8x1xf32>
    %175 = vector.shape_cast %172 : vector<8x1xf32> to vector<1x8x1xf32>
    tpu.vector_store %arg16[%c0_135, %c0_136, %c0_137], %175 {strides = array<i32>} : memref<2x8x1xf32, #tpu.memory_space<vmem>>, vector<1x8x1xf32>,
    %c1_138 = arith.constant 1 : index
    %c0_139 = arith.constant 0 : index
    %c0_140 = arith.constant 0 : index
    %176 = vector.load %arg1[%c1_138, %c0_139, %c0_140] : memref<2x64x16xf32, #tpu.memory_space<vmem>>, vector<1x64x16xf32>
    %177 = vector.shape_cast %176 : vector<1x64x16xf32> to vector<64x16xf32>
    %cst_141 = arith.constant dense<0.000000e+00> : vector<16x16xf32>
    %178 = tpu.matmul %0, %177, %cst_141 {dimension_numbers = #tpu.dot_dimension_numbers<[1], [0], [0], [1], [0, 0, 1, 1], [], []>} : vector<16x64xf32>, vector<64x16xf32>, vector<16x16xf32> -> vector<16x16xf32>
    %179 = vector.broadcast %2 : vector<16x1xf32> to vector<16x16xf32>
    %180 = arith.addf %178, %179 : vector<16x16xf32>
    %cst_142 = arith.constant 0.000000e+00 : f32
    %181 = vector.broadcast %cst_142 : f32 to vector<16x16xf32>
    %182 = arith.cmpf ogt, %180, %181 : vector<16x16xf32>
    %cst_143 = arith.constant 0.000000e+00 : f32
    %183 = vector.broadcast %cst_143 : f32 to vector<16x16xf32>
    %184 = arith.minimumf %180, %183 : vector<16x16xf32>
    %185 = math.exp %184 : vector<16x16xf32>
    %cst_144 = arith.constant 1.000000e+00 : f32
    %186 = vector.broadcast %cst_144 : f32 to vector<16x16xf32>
    %187 = arith.subf %185, %186 : vector<16x16xf32>
    %188 = arith.select %182, %180, %187 : vector<16x16xi1>, vector<16x16xf32>
    %189 = vector.broadcast %3 : vector<16x1xf32> to vector<16x16xf32>
    %190 = arith.mulf %188, %189 : vector<16x16xf32>
    %191 = vector.broadcast %4 : vector<16x1xf32> to vector<16x16xf32>
    %192 = arith.addf %190, %191 : vector<16x16xf32>
    %cst_145 = arith.constant dense<0.000000e+00> : vector<16x16xf32>
    %193 = tpu.matmul %9, %192, %cst_145 {dimension_numbers = #tpu.dot_dimension_numbers<[1], [0], [0], [1], [0, 0, 1, 1], [], []>} : vector<16x16xf32>, vector<16x16xf32>, vector<16x16xf32> -> vector<16x16xf32>
    %cst_146 = arith.constant dense<0.000000e+00> : vector<16x72xf32>
    %194 = tpu.matmul %192, %6, %cst_146 {dimension_numbers = #tpu.dot_dimension_numbers<[1], [0], [0], [1], [0, 0, 1, 1], [], []>} : vector<16x16xf32>, vector<16x72xf32>, vector<16x72xf32> -> vector<16x72xf32>
    %cst_147 = arith.constant dense<0.000000e+00> : vector<16x72xf32>
    %195 = tpu.matmul %193, %8, %cst_147 {dimension_numbers = #tpu.dot_dimension_numbers<[1], [0], [0], [1], [0, 0, 1, 1], [], []>} : vector<16x16xf32>, vector<16x72xf32>, vector<16x72xf32> -> vector<16x72xf32>
    %196 = arith.addf %194, %195 : vector<16x72xf32>
    %197 = vector.broadcast %11 : vector<1x72xf32> to vector<16x72xf32>
    %198 = arith.addf %196, %197 : vector<16x72xf32>
    %cst_148 = arith.constant 0.000000e+00 : f32
    %199 = vector.broadcast %cst_148 : f32 to vector<16x72xf32>
    %200 = arith.cmpf ogt, %198, %199 : vector<16x72xf32>
    %cst_149 = arith.constant 0.000000e+00 : f32
    %201 = vector.broadcast %cst_149 : f32 to vector<16x72xf32>
    %202 = arith.minimumf %198, %201 : vector<16x72xf32>
    %203 = math.exp %202 : vector<16x72xf32>
    %cst_150 = arith.constant 1.000000e+00 : f32
    %204 = vector.broadcast %cst_150 : f32 to vector<16x72xf32>
    %205 = arith.subf %203, %204 : vector<16x72xf32>
    %206 = arith.select %200, %198, %205 : vector<16x72xi1>, vector<16x72xf32>
    %207 = vector.broadcast %12 : vector<1x72xf32> to vector<16x72xf32>
    %208 = arith.mulf %206, %207 : vector<16x72xf32>
    %209 = vector.broadcast %13 : vector<1x72xf32> to vector<16x72xf32>
    %210 = arith.addf %208, %209 : vector<16x72xf32>
    %cst_151 = arith.constant dense<0.000000e+00> : vector<16x20xf32>
    %211 = tpu.matmul %210, %15, %cst_151 {dimension_numbers = #tpu.dot_dimension_numbers<[1], [0], [0], [1], [0, 0, 1, 1], [], []>} : vector<16x72xf32>, vector<72x20xf32>, vector<16x20xf32> -> vector<16x20xf32>
    %cst_152 = arith.constant dense<0.000000e+00> : vector<16x20xf32>
    %212 = tpu.matmul %210, %17, %cst_152 {dimension_numbers = #tpu.dot_dimension_numbers<[1], [0], [0], [1], [0, 0, 1, 1], [], []>} : vector<16x72xf32>, vector<72x20xf32>, vector<16x20xf32> -> vector<16x20xf32>
    %213 = arith.maximumf %211, %212 : vector<16x20xf32>
    %cst_153 = arith.constant dense<0.000000e+00> : vector<4x20xf32>
    %214 = tpu.matmul %19, %213, %cst_153 {dimension_numbers = #tpu.dot_dimension_numbers<[1], [0], [0], [1], [0, 0, 1, 1], [], []>} : vector<4x16xf32>, vector<16x20xf32>, vector<4x20xf32> -> vector<4x20xf32>
    %cst_154 = arith.constant dense<0.000000e+00> : vector<4x20xf32>
    %215 = tpu.matmul %21, %213, %cst_154 {dimension_numbers = #tpu.dot_dimension_numbers<[1], [0], [0], [1], [0, 0, 1, 1], [], []>} : vector<4x16xf32>, vector<16x20xf32>, vector<4x20xf32> -> vector<4x20xf32>
    %216 = arith.maximumf %214, %215 : vector<4x20xf32>
    %c0_155 = arith.constant 0 : index
    %c0_156 = arith.constant 0 : index
    %c0_157 = arith.constant 0 : index
    %217 = vector.load %arg9[%c0_155, %c0_156, %c0_157] : memref<4x16x4xf32, #tpu.memory_space<vmem>>, vector<1x16x4xf32>
    %218 = vector.shape_cast %217 : vector<1x16x4xf32> to vector<16x4xf32>
    %c0_158 = arith.constant 0 : index
    %c0_159 = arith.constant 0 : index
    %c0_160 = arith.constant 0 : index
    %219 = vector.load %arg10[%c0_158, %c0_159, %c0_160] : memref<4x20x5xf32, #tpu.memory_space<vmem>>, vector<1x20x5xf32>
    %220 = vector.shape_cast %219 : vector<1x20x5xf32> to vector<20x5xf32>
    %cst_161 = arith.constant dense<0.000000e+00> : vector<4x5xf32>
    %221 = tpu.matmul %216, %220, %cst_161 {dimension_numbers = #tpu.dot_dimension_numbers<[1], [0], [0], [1], [0, 0, 1, 1], [], []>} : vector<4x20xf32>, vector<20x5xf32>, vector<4x5xf32> -> vector<4x5xf32>
    %cst_162 = arith.constant dense<0.000000e+00> : vector<16x5xf32>
    %222 = tpu.matmul %218, %221, %cst_162 {dimension_numbers = #tpu.dot_dimension_numbers<[1], [0], [0], [1], [0, 0, 1, 1], [], []>} : vector<16x4xf32>, vector<4x5xf32>, vector<16x5xf32> -> vector<16x5xf32>
    %c1_163 = arith.constant 1 : index
    %c0_164 = arith.constant 0 : index
    %c0_165 = arith.constant 0 : index
    %223 = vector.load %arg9[%c1_163, %c0_164, %c0_165] : memref<4x16x4xf32, #tpu.memory_space<vmem>>, vector<1x16x4xf32>
    %224 = vector.shape_cast %223 : vector<1x16x4xf32> to vector<16x4xf32>
    %c1_166 = arith.constant 1 : index
    %c0_167 = arith.constant 0 : index
    %c0_168 = arith.constant 0 : index
    %225 = vector.load %arg10[%c1_166, %c0_167, %c0_168] : memref<4x20x5xf32, #tpu.memory_space<vmem>>, vector<1x20x5xf32>
    %226 = vector.shape_cast %225 : vector<1x20x5xf32> to vector<20x5xf32>
    %cst_169 = arith.constant dense<0.000000e+00> : vector<4x5xf32>
    %227 = tpu.matmul %216, %226, %cst_169 {dimension_numbers = #tpu.dot_dimension_numbers<[1], [0], [0], [1], [0, 0, 1, 1], [], []>} : vector<4x20xf32>, vector<20x5xf32>, vector<4x5xf32> -> vector<4x5xf32>
    %cst_170 = arith.constant dense<0.000000e+00> : vector<16x5xf32>
    %228 = tpu.matmul %224, %227, %cst_170 {dimension_numbers = #tpu.dot_dimension_numbers<[1], [0], [0], [1], [0, 0, 1, 1], [], []>} : vector<16x4xf32>, vector<4x5xf32>, vector<16x5xf32> -> vector<16x5xf32>
    %229 = arith.addf %222, %228 : vector<16x5xf32>
    %c2_171 = arith.constant 2 : index
    %c0_172 = arith.constant 0 : index
    %c0_173 = arith.constant 0 : index
    %230 = vector.load %arg9[%c2_171, %c0_172, %c0_173] : memref<4x16x4xf32, #tpu.memory_space<vmem>>, vector<1x16x4xf32>
    %231 = vector.shape_cast %230 : vector<1x16x4xf32> to vector<16x4xf32>
    %c2_174 = arith.constant 2 : index
    %c0_175 = arith.constant 0 : index
    %c0_176 = arith.constant 0 : index
    %232 = vector.load %arg10[%c2_174, %c0_175, %c0_176] : memref<4x20x5xf32, #tpu.memory_space<vmem>>, vector<1x20x5xf32>
    %233 = vector.shape_cast %232 : vector<1x20x5xf32> to vector<20x5xf32>
    %cst_177 = arith.constant dense<0.000000e+00> : vector<4x5xf32>
    %234 = tpu.matmul %216, %233, %cst_177 {dimension_numbers = #tpu.dot_dimension_numbers<[1], [0], [0], [1], [0, 0, 1, 1], [], []>} : vector<4x20xf32>, vector<20x5xf32>, vector<4x5xf32> -> vector<4x5xf32>
    %cst_178 = arith.constant dense<0.000000e+00> : vector<16x5xf32>
    %235 = tpu.matmul %231, %234, %cst_178 {dimension_numbers = #tpu.dot_dimension_numbers<[1], [0], [0], [1], [0, 0, 1, 1], [], []>} : vector<16x4xf32>, vector<4x5xf32>, vector<16x5xf32> -> vector<16x5xf32>
    %236 = arith.addf %229, %235 : vector<16x5xf32>
    %c3_179 = arith.constant 3 : index
    %c0_180 = arith.constant 0 : index
    %c0_181 = arith.constant 0 : index
    %237 = vector.load %arg9[%c3_179, %c0_180, %c0_181] : memref<4x16x4xf32, #tpu.memory_space<vmem>>, vector<1x16x4xf32>
    %238 = vector.shape_cast %237 : vector<1x16x4xf32> to vector<16x4xf32>
    %c3_182 = arith.constant 3 : index
    %c0_183 = arith.constant 0 : index
    %c0_184 = arith.constant 0 : index
    %239 = vector.load %arg10[%c3_182, %c0_183, %c0_184] : memref<4x20x5xf32, #tpu.memory_space<vmem>>, vector<1x20x5xf32>
    %240 = vector.shape_cast %239 : vector<1x20x5xf32> to vector<20x5xf32>
    %cst_185 = arith.constant dense<0.000000e+00> : vector<4x5xf32>
    %241 = tpu.matmul %216, %240, %cst_185 {dimension_numbers = #tpu.dot_dimension_numbers<[1], [0], [0], [1], [0, 0, 1, 1], [], []>} : vector<4x20xf32>, vector<20x5xf32>, vector<4x5xf32> -> vector<4x5xf32>
    %cst_186 = arith.constant dense<0.000000e+00> : vector<16x5xf32>
    %242 = tpu.matmul %238, %241, %cst_186 {dimension_numbers = #tpu.dot_dimension_numbers<[1], [0], [0], [1], [0, 0, 1, 1], [], []>} : vector<16x4xf32>, vector<4x5xf32>, vector<16x5xf32> -> vector<16x5xf32>
    %243 = arith.addf %236, %242 : vector<16x5xf32>
    %c0_187 = arith.constant 0 : index
    %c0_188 = arith.constant 0 : index
    %c0_189 = arith.constant 0 : index
    %244 = vector.load %arg11[%c0_187, %c0_188, %c0_189] : memref<4x16x16xf32, #tpu.memory_space<vmem>>, vector<1x16x16xf32>
    %245 = vector.shape_cast %244 : vector<1x16x16xf32> to vector<16x16xf32>
    %c0_190 = arith.constant 0 : index
    %c0_191 = arith.constant 0 : index
    %c0_192 = arith.constant 0 : index
    %246 = vector.load %arg12[%c0_190, %c0_191, %c0_192] : memref<4x5x5xf32, #tpu.memory_space<vmem>>, vector<1x5x5xf32>
    %247 = vector.shape_cast %246 : vector<1x5x5xf32> to vector<5x5xf32>
    %cst_193 = arith.constant dense<0.000000e+00> : vector<16x5xf32>
    %248 = tpu.matmul %243, %247, %cst_193 {dimension_numbers = #tpu.dot_dimension_numbers<[1], [0], [0], [1], [0, 0, 1, 1], [], []>} : vector<16x5xf32>, vector<5x5xf32>, vector<16x5xf32> -> vector<16x5xf32>
    %cst_194 = arith.constant dense<0.000000e+00> : vector<16x5xf32>
    %249 = tpu.matmul %245, %248, %cst_194 {dimension_numbers = #tpu.dot_dimension_numbers<[1], [0], [0], [1], [0, 0, 1, 1], [], []>} : vector<16x16xf32>, vector<16x5xf32>, vector<16x5xf32> -> vector<16x5xf32>
    %250 = vector.broadcast %23 : vector<16x1xf32> to vector<16x5xf32>
    %251 = arith.addf %250, %249 : vector<16x5xf32>
    %c1_195 = arith.constant 1 : index
    %c0_196 = arith.constant 0 : index
    %c0_197 = arith.constant 0 : index
    %252 = vector.load %arg11[%c1_195, %c0_196, %c0_197] : memref<4x16x16xf32, #tpu.memory_space<vmem>>, vector<1x16x16xf32>
    %253 = vector.shape_cast %252 : vector<1x16x16xf32> to vector<16x16xf32>
    %c1_198 = arith.constant 1 : index
    %c0_199 = arith.constant 0 : index
    %c0_200 = arith.constant 0 : index
    %254 = vector.load %arg12[%c1_198, %c0_199, %c0_200] : memref<4x5x5xf32, #tpu.memory_space<vmem>>, vector<1x5x5xf32>
    %255 = vector.shape_cast %254 : vector<1x5x5xf32> to vector<5x5xf32>
    %cst_201 = arith.constant dense<0.000000e+00> : vector<16x5xf32>
    %256 = tpu.matmul %243, %255, %cst_201 {dimension_numbers = #tpu.dot_dimension_numbers<[1], [0], [0], [1], [0, 0, 1, 1], [], []>} : vector<16x5xf32>, vector<5x5xf32>, vector<16x5xf32> -> vector<16x5xf32>
    %cst_202 = arith.constant dense<0.000000e+00> : vector<16x5xf32>
    %257 = tpu.matmul %253, %256, %cst_202 {dimension_numbers = #tpu.dot_dimension_numbers<[1], [0], [0], [1], [0, 0, 1, 1], [], []>} : vector<16x16xf32>, vector<16x5xf32>, vector<16x5xf32> -> vector<16x5xf32>
    %258 = arith.addf %251, %257 : vector<16x5xf32>
    %c2_203 = arith.constant 2 : index
    %c0_204 = arith.constant 0 : index
    %c0_205 = arith.constant 0 : index
    %259 = vector.load %arg11[%c2_203, %c0_204, %c0_205] : memref<4x16x16xf32, #tpu.memory_space<vmem>>, vector<1x16x16xf32>
    %260 = vector.shape_cast %259 : vector<1x16x16xf32> to vector<16x16xf32>
    %c2_206 = arith.constant 2 : index
    %c0_207 = arith.constant 0 : index
    %c0_208 = arith.constant 0 : index
    %261 = vector.load %arg12[%c2_206, %c0_207, %c0_208] : memref<4x5x5xf32, #tpu.memory_space<vmem>>, vector<1x5x5xf32>
    %262 = vector.shape_cast %261 : vector<1x5x5xf32> to vector<5x5xf32>
    %cst_209 = arith.constant dense<0.000000e+00> : vector<16x5xf32>
    %263 = tpu.matmul %243, %262, %cst_209 {dimension_numbers = #tpu.dot_dimension_numbers<[1], [0], [0], [1], [0, 0, 1, 1], [], []>} : vector<16x5xf32>, vector<5x5xf32>, vector<16x5xf32> -> vector<16x5xf32>
    %cst_210 = arith.constant dense<0.000000e+00> : vector<16x5xf32>
    %264 = tpu.matmul %260, %263, %cst_210 {dimension_numbers = #tpu.dot_dimension_numbers<[1], [0], [0], [1], [0, 0, 1, 1], [], []>} : vector<16x16xf32>, vector<16x5xf32>, vector<16x5xf32> -> vector<16x5xf32>
    %265 = arith.addf %258, %264 : vector<16x5xf32>
    %c3_211 = arith.constant 3 : index
    %c0_212 = arith.constant 0 : index
    %c0_213 = arith.constant 0 : index
    %266 = vector.load %arg11[%c3_211, %c0_212, %c0_213] : memref<4x16x16xf32, #tpu.memory_space<vmem>>, vector<1x16x16xf32>
    %267 = vector.shape_cast %266 : vector<1x16x16xf32> to vector<16x16xf32>
    %c3_214 = arith.constant 3 : index
    %c0_215 = arith.constant 0 : index
    %c0_216 = arith.constant 0 : index
    %268 = vector.load %arg12[%c3_214, %c0_215, %c0_216] : memref<4x5x5xf32, #tpu.memory_space<vmem>>, vector<1x5x5xf32>
    %269 = vector.shape_cast %268 : vector<1x5x5xf32> to vector<5x5xf32>
    %cst_217 = arith.constant dense<0.000000e+00> : vector<16x5xf32>
    %270 = tpu.matmul %243, %269, %cst_217 {dimension_numbers = #tpu.dot_dimension_numbers<[1], [0], [0], [1], [0, 0, 1, 1], [], []>} : vector<16x5xf32>, vector<5x5xf32>, vector<16x5xf32> -> vector<16x5xf32>
    %cst_218 = arith.constant dense<0.000000e+00> : vector<16x5xf32>
    %271 = tpu.matmul %267, %270, %cst_218 {dimension_numbers = #tpu.dot_dimension_numbers<[1], [0], [0], [1], [0, 0, 1, 1], [], []>} : vector<16x16xf32>, vector<16x5xf32>, vector<16x5xf32> -> vector<16x5xf32>
    %272 = arith.addf %265, %271 : vector<16x5xf32>
    %cst_219 = arith.constant 0.000000e+00 : f32
    %273 = vector.broadcast %cst_219 : f32 to vector<16x5xf32>
    %274 = arith.cmpf ogt, %272, %273 : vector<16x5xf32>
    %cst_220 = arith.constant 0.000000e+00 : f32
    %275 = vector.broadcast %cst_220 : f32 to vector<16x5xf32>
    %276 = arith.minimumf %272, %275 : vector<16x5xf32>
    %277 = math.exp %276 : vector<16x5xf32>
    %cst_221 = arith.constant 1.000000e+00 : f32
    %278 = vector.broadcast %cst_221 : f32 to vector<16x5xf32>
    %279 = arith.subf %277, %278 : vector<16x5xf32>
    %280 = arith.select %274, %272, %279 : vector<16x5xi1>, vector<16x5xf32>
    %281 = vector.broadcast %24 : vector<16x1xf32> to vector<16x5xf32>
    %282 = arith.mulf %280, %281 : vector<16x5xf32>
    %283 = vector.broadcast %25 : vector<16x1xf32> to vector<16x5xf32>
    %284 = arith.addf %282, %283 : vector<16x5xf32>
    %c0_222 = arith.constant 0 : index
    %c0_223 = arith.constant 0 : index
    %c0_224 = arith.constant 0 : index
    %285 = vector.load %arg14[%c0_222, %c0_223, %c0_224] : memref<4x5x1xf32, #tpu.memory_space<vmem>>, vector<1x5x1xf32>
    %286 = vector.shape_cast %285 : vector<1x5x1xf32> to vector<5x1xf32>
    %cst_225 = arith.constant dense<0.000000e+00> : vector<16x1xf32>
    %287 = tpu.matmul %284, %286, %cst_225 {dimension_numbers = #tpu.dot_dimension_numbers<[1], [0], [0], [1], [0, 0, 1, 1], [], []>} : vector<16x5xf32>, vector<5x1xf32>, vector<16x1xf32> -> vector<16x1xf32>
    %c1_226 = arith.constant 1 : index
    %c0_227 = arith.constant 0 : index
    %c0_228 = arith.constant 0 : index
    %288 = vector.load %arg14[%c1_226, %c0_227, %c0_228] : memref<4x5x1xf32, #tpu.memory_space<vmem>>, vector<1x5x1xf32>
    %289 = vector.shape_cast %288 : vector<1x5x1xf32> to vector<5x1xf32>
    %cst_229 = arith.constant dense<0.000000e+00> : vector<16x1xf32>
    %290 = tpu.matmul %284, %289, %cst_229 {dimension_numbers = #tpu.dot_dimension_numbers<[1], [0], [0], [1], [0, 0, 1, 1], [], []>} : vector<16x5xf32>, vector<5x1xf32>, vector<16x1xf32> -> vector<16x1xf32>
    %291 = arith.maximumf %287, %290 : vector<16x1xf32>
    %c2_230 = arith.constant 2 : index
    %c0_231 = arith.constant 0 : index
    %c0_232 = arith.constant 0 : index
    %292 = vector.load %arg14[%c2_230, %c0_231, %c0_232] : memref<4x5x1xf32, #tpu.memory_space<vmem>>, vector<1x5x1xf32>
    %293 = vector.shape_cast %292 : vector<1x5x1xf32> to vector<5x1xf32>
    %cst_233 = arith.constant dense<0.000000e+00> : vector<16x1xf32>
    %294 = tpu.matmul %284, %293, %cst_233 {dimension_numbers = #tpu.dot_dimension_numbers<[1], [0], [0], [1], [0, 0, 1, 1], [], []>} : vector<16x5xf32>, vector<5x1xf32>, vector<16x1xf32> -> vector<16x1xf32>
    %295 = arith.maximumf %291, %294 : vector<16x1xf32>
    %c3_234 = arith.constant 3 : index
    %c0_235 = arith.constant 0 : index
    %c0_236 = arith.constant 0 : index
    %296 = vector.load %arg14[%c3_234, %c0_235, %c0_236] : memref<4x5x1xf32, #tpu.memory_space<vmem>>, vector<1x5x1xf32>
    %297 = vector.shape_cast %296 : vector<1x5x1xf32> to vector<5x1xf32>
    %cst_237 = arith.constant dense<0.000000e+00> : vector<16x1xf32>
    %298 = tpu.matmul %284, %297, %cst_237 {dimension_numbers = #tpu.dot_dimension_numbers<[1], [0], [0], [1], [0, 0, 1, 1], [], []>} : vector<16x5xf32>, vector<5x1xf32>, vector<16x1xf32> -> vector<16x1xf32>
    %299 = arith.maximumf %295, %298 : vector<16x1xf32>
    %cst_238 = arith.constant dense<0.000000e+00> : vector<8x1xf32>
    %300 = tpu.matmul %27, %299, %cst_238 {dimension_numbers = #tpu.dot_dimension_numbers<[1], [0], [0], [1], [0, 0, 1, 1], [], []>} : vector<8x16xf32>, vector<16x1xf32>, vector<8x1xf32> -> vector<8x1xf32>
    %cst_239 = arith.constant dense<0.000000e+00> : vector<8x1xf32>
    %301 = tpu.matmul %29, %299, %cst_239 {dimension_numbers = #tpu.dot_dimension_numbers<[1], [0], [0], [1], [0, 0, 1, 1], [], []>} : vector<8x16xf32>, vector<16x1xf32>, vector<8x1xf32> -> vector<8x1xf32>
    %302 = arith.maximumf %300, %301 : vector<8x1xf32>
    %cst_240 = arith.constant dense<0xFF800000> : vector<8xf32>
    %303 = vector.multi_reduction <maximumf>, %302, %cst_240 [1] : vector<8x1xf32> to vector<8xf32>
    %304 = vector.shape_cast %303 : vector<8xf32> to vector<8x1xf32>
    %cst_241 = arith.constant dense<0xFF800000> : vector<1xf32>
    %305 = vector.multi_reduction <maximumf>, %304, %cst_241 [0] : vector<8x1xf32> to vector<1xf32>
    %306 = vector.shape_cast %305 : vector<1xf32> to vector<1x1xf32>
    %307 = vector.broadcast %306 : vector<1x1xf32> to vector<8x1xf32>
    %308 = arith.subf %302, %307 : vector<8x1xf32>
    %309 = math.exp %308 : vector<8x1xf32>
    %cst_242 = arith.constant dense<0.000000e+00> : vector<8xf32>
    %310 = vector.multi_reduction <add>, %309, %cst_242 [1] : vector<8x1xf32> to vector<8xf32>
    %311 = vector.shape_cast %310 : vector<8xf32> to vector<8x1xf32>
    %cst_243 = arith.constant dense<0.000000e+00> : vector<1xf32>
    %312 = vector.multi_reduction <add>, %311, %cst_243 [0] : vector<8x1xf32> to vector<1xf32>
    %313 = vector.shape_cast %312 : vector<1xf32> to vector<1x1xf32>
    %314 = vector.broadcast %306 : vector<1x1xf32> to vector<8x1xf32>
    %315 = arith.subf %302, %314 : vector<8x1xf32>
    %316 = math.log %313 : vector<1x1xf32>
    %317 = vector.broadcast %316 : vector<1x1xf32> to vector<8x1xf32>
    %318 = arith.subf %315, %317 : vector<8x1xf32>
    %c1_244 = arith.constant 1 : index
    %c0_245 = arith.constant 0 : index
    %c0_246 = arith.constant 0 : index
    %319 = vector.load %arg16[%c1_244, %c0_245, %c0_246] : memref<2x8x1xf32, #tpu.memory_space<vmem>>, vector<1x8x1xf32>
    %320 = vector.shape_cast %319 : vector<1x8x1xf32> to vector<8x1xf32>
    %321 = vector.shape_cast %318 : vector<8x1xf32> to vector<1x8x1xf32>
    tpu.vector_store %arg16[%c1_244, %c0_245, %c0_246], %321 {strides = array<i32>} : memref<2x8x1xf32, #tpu.memory_space<vmem>>, vector<1x8x1xf32>,
    return
  }
  func.func @transform_0(%arg0: i32) -> (i32, i32, i32) {
    %c0_i32 = arith.constant 0 : i32
    %c0_i32_0 = arith.constant 0 : i32
    %c0_i32_1 = arith.constant 0 : i32
    return %arg0, %c0_i32, %c0_i32_0 : i32, i32, i32
  }
  func.func @transform_1(%arg0: i32) -> (i32, i32) {
    %c0_i32 = arith.constant 0 : i32
    %c0_i32_0 = arith.constant 0 : i32
    %c0_i32_1 = arith.constant 0 : i32
    return %c0_i32, %c0_i32_0 : i32, i32
  }
  func.func @transform_2(%arg0: i32) -> (i32, i32) {
    %c0_i32 = arith.constant 0 : i32
    %c0_i32_0 = arith.constant 0 : i32
    %c0_i32_1 = arith.constant 0 : i32
    return %c0_i32, %c0_i32_0 : i32, i32
  }
  func.func @transform_3(%arg0: i32) -> (i32, i32, i32) {
    %c0_i32 = arith.constant 0 : i32
    %c0_i32_0 = arith.constant 0 : i32
    %c0_i32_1 = arith.constant 0 : i32
    %c0_i32_2 = arith.constant 0 : i32
    return %c0_i32, %c0_i32_0, %c0_i32_1 : i32, i32, i32
  }
  func.func @transform_4(%arg0: i32) -> (i32, i32) {
    %c0_i32 = arith.constant 0 : i32
    %c0_i32_0 = arith.constant 0 : i32
    %c0_i32_1 = arith.constant 0 : i32
    return %c0_i32, %c0_i32_0 : i32, i32
  }
  func.func @transform_5(%arg0: i32) -> (i32, i32) {
    %c0_i32 = arith.constant 0 : i32
    %c0_i32_0 = arith.constant 0 : i32
    %c0_i32_1 = arith.constant 0 : i32
    return %c0_i32, %c0_i32_0 : i32, i32
  }
  func.func @transform_6(%arg0: i32) -> (i32, i32, i32) {
    %c0_i32 = arith.constant 0 : i32
    %c0_i32_0 = arith.constant 0 : i32
    %c0_i32_1 = arith.constant 0 : i32
    %c0_i32_2 = arith.constant 0 : i32
    return %c0_i32, %c0_i32_0, %c0_i32_1 : i32, i32, i32
  }
  func.func @transform_7(%arg0: i32) -> (i32, i32, i32) {
    %c0_i32 = arith.constant 0 : i32
    %c0_i32_0 = arith.constant 0 : i32
    %c0_i32_1 = arith.constant 0 : i32
    %c0_i32_2 = arith.constant 0 : i32
    return %c0_i32, %c0_i32_0, %c0_i32_1 : i32, i32, i32
  }
  func.func @transform_8(%arg0: i32) -> (i32, i32, i32) {
    %c0_i32 = arith.constant 0 : i32
    %c0_i32_0 = arith.constant 0 : i32
    %c0_i32_1 = arith.constant 0 : i32
    %c0_i32_2 = arith.constant 0 : i32
    return %c0_i32, %c0_i32_0, %c0_i32_1 : i32, i32, i32
  }
  func.func @transform_9(%arg0: i32) -> (i32, i32, i32) {
    %c0_i32 = arith.constant 0 : i32
    %c0_i32_0 = arith.constant 0 : i32
    %c0_i32_1 = arith.constant 0 : i32
    %c0_i32_2 = arith.constant 0 : i32
    return %c0_i32, %c0_i32_0, %c0_i32_1 : i32, i32, i32
  }
  func.func @transform_10(%arg0: i32) -> (i32, i32, i32) {
    %c0_i32 = arith.constant 0 : i32
    %c0_i32_0 = arith.constant 0 : i32
    %c0_i32_1 = arith.constant 0 : i32
    %c0_i32_2 = arith.constant 0 : i32
    return %c0_i32, %c0_i32_0, %c0_i32_1 : i32, i32, i32
  }
  func.func @transform_11(%arg0: i32) -> (i32, i32, i32) {
    %c0_i32 = arith.constant 0 : i32
    %c0_i32_0 = arith.constant 0 : i32
    %c0_i32_1 = arith.constant 0 : i32
    %c0_i32_2 = arith.constant 0 : i32
    return %c0_i32, %c0_i32_0, %c0_i32_1 : i32, i32, i32
  }
  func.func @transform_12(%arg0: i32) -> (i32, i32) {
    %c0_i32 = arith.constant 0 : i32
    %c0_i32_0 = arith.constant 0 : i32
    %c0_i32_1 = arith.constant 0 : i32
    return %c0_i32, %c0_i32_0 : i32, i32
  }
  func.func @transform_13(%arg0: i32) -> (i32, i32, i32) {
    %c0_i32 = arith.constant 0 : i32
    %c0_i32_0 = arith.constant 0 : i32
    %c0_i32_1 = arith.constant 0 : i32
    %c0_i32_2 = arith.constant 0 : i32
    return %c0_i32, %c0_i32_0, %c0_i32_1 : i32, i32, i32
  }
  func.func @transform_14(%arg0: i32) -> (i32, i32, i32) {
    %c0_i32 = arith.constant 0 : i32
    %c0_i32_0 = arith.constant 0 : i32
    %c0_i32_1 = arith.constant 0 : i32
    %c0_i32_2 = arith.constant 0 : i32
    return %c0_i32, %c0_i32_0, %c0_i32_1 : i32, i32, i32
  }
  func.func @transform_15(%arg0: i32) -> (i32, i32, i32) {
    %c0_i32 = arith.constant 0 : i32
    %c0_i32_0 = arith.constant 0 : i32
    %c0_i32_1 = arith.constant 0 : i32
    return %arg0, %c0_i32, %c0_i32_0 : i32, i32, i32
  }
}

</mosaic_0001>

<bundles_post_ra>
// kernel: eegnet_forward.1
= control target key start
LH: loop header
LB: loop body
LE: loop exit
PB: predicated region body
PF: predicated region fallthrough
CT: control target
= control target key end

     0   :  { %vm107_vm0 = vcmask 523264   ;;  %v6380_v3 = vmov 0   ;;  %v6381_v4 = vmov 1   ;;  %v6382_v17 = vmov 2   ;;  %s7247_s0 = inlined_call_operand.vmem [shape: f32[2,64,16], index: 0, kind: input, shape index: {}]   ;;  %s7248_s1 = inlined_call_operand.vmem [shape: f32[16,64], index: 1, kind: input, shape index: {}]   ;;  %s7249_s2 = inlined_call_operand.vmem [shape: f32[16,3], index: 2, kind: input, shape index: {}]   ;;  %s7250_s4 = inlined_call_operand.vmem [shape: f32[16,16], index: 4, kind: input, shape index: {}]   ;;  %s7251_s3 = inlined_call_operand.vmem [shape: f32[2,16,72], index: 3, kind: input, shape index: {}]   ;;  %s7252_s6 = inlined_call_operand.vmem [shape: f32[2,72,20], index: 6, kind: input, shape index: {}]   ;;  %s7253_s5 = inlined_call_operand.vmem [shape: f32[3,72], index: 5, kind: input, shape index: {}]   ;;  %s7254_s9 = inlined_call_operand.vmem [shape: f32[4,20,5], index: 9, kind: input, shape index: {}]   ;;  %s7255_s7 = inlined_call_operand.vmem [shape: f32[2,4,16], index: 7, kind: input, shape index: {}]   ;;  %s7256_s8 = inlined_call_operand.vmem [shape: f32[4,16,4], index: 8, kind: input, shape index: {}]   ;;  %s7257_s11 = inlined_call_operand.vmem [shape: f32[4,5,5], index: 11, kind: input, shape index: {}]   ;;  %s7258_s10 = inlined_call_operand.vmem [shape: f32[4,16,16], index: 10, kind: input, shape index: {}]   ;;  %s7259_s12 = inlined_call_operand.vmem [shape: f32[16,3], index: 12, kind: input, shape index: {}]   ;;  %s7260_s13 = inlined_call_operand.vmem [shape: f32[4,5,1], index: 13, kind: input, shape index: {}]   ;;  %s7261_s14 = inlined_call_operand.vmem [shape: f32[2,8,16], index: 14, kind: input, shape index: {}]   ;;  %s7262_s15 = inlined_call_operand.vmem [shape: f32[2,8,1], index: 15, kind: output, shape index: {}]  }
   0x1   :  { %v89_v0 = vld [vmem:[%s7247_s0] sm:$0xff]  ;;  %v90_v1 = vld [vmem:[%s7247_s0 + $0x8] sm:$0xff]  ;;  %v91_v2 = vld [vmem:[%s7247_s0 + $0x10] sm:$0xff]  ;;  %6339 = vset.pattern.permute.xlu0 %v6380_v3  ;;  %6340 = vset.pattern.permute.xlu1 %v6381_v4  ;;  %vm221_vm1 = vcmask 130048   ;;  %vm495_vm6 = vcmask 588800   ;;  %vm6384_vm7 = vmmov 0  }
   0x2   :  { %v6101_v5 = vpack.c.bf16 %v90_v1, %v89_v0  ;;  %v92_v6 = vld [vmem:[%s7247_s0 + $0x18] sm:$0xff]  ;;  %v93_v8 = vld [vmem:[%s7247_s0 + $0x20] sm:$0xff]  ;;  %v94_v9 = vld [vmem:[%s7247_s0 + $0x28] sm:$0xff]  ;;  %vm810_vm8 = vcmask 1043456   ;;  %vm806_vm9 = vcmask 162816   ;;  %vm964_vm10 = vcmask 31744  }
   0x3   :  { %v6105_v7 = vpack.c.bf16 %v92_v6, %v91_v2  ;;  %v6488_v10 = vld [vmem:[%s7248_s1] sm:$0xff]  ;;  %v6109_v12 = vpack.c.bf16 %v94_v9, %v93_v8  ;;  %v53_v13 = vld [vmem:[%s7249_s2 + $0x8] sm:$0xff]  ;;  %v95_v14 = vld [vmem:[%s7247_s0 + $0x30] sm:$0xff]  ;;  %vm1475_vm11 = vcmask 1044480   ;;  %vm1468_vm12 = vcmask 39936  }
   0x4   :  { %6102 = vmatprep.subr.bf16.mxu0 %v6101_v5  ;;  %5649 = vmatprep.mubr.msk.f32.mxu0 %vm107_vm0, %v6488_v10  ;;  %v52_v11 = vld [vmem:[%s7249_s2] sm:$0xff]  ;;  %v96_v15 = vld [vmem:[%s7247_s0 + $0x38] sm:$0xff]  ;;  %v6509_v18 = vld [vmem:[%s7248_s1 + $0x8] sm:$0xff]  ;;  %vm2655_vm15 = vcmask 7168  }
   0x5   :  { %6104 = vmatpush3.bf16.msra.mxu0 %v6101_v5  ;;  %99 = vperm.xlu0 %6339, %v52_v11   ;;  %v6113_v16 = vpack.c.bf16 %v96_v15, %v95_v14  ;;  %v6516_v19 = vld [vmem:[%s7250_s4] sm:$0xff]  ;;  %v5161_v43 = vld [vmem:[%s7251_s3 + $0x10] sm:$0xff]  ;;  %v5162_v44 = vld [vmem:[%s7251_s3 + $0x18] sm:$0xff] }
   0x6   :  { %6106 = vmatprep.subr.bf16.mxu0 %v6105_v7  ;;  %202 = vperm.xlu1 %6340, %v52_v11   ;;  %v6544_v47 = vpack.c.bf16 %v5162_v44, %v5161_v43  ;;  %v6549_v48 = vld [vmem:[%s7250_s4 + $0x8] sm:$0xff]  ;;  %v54_v49 = vld [vmem:[%s7251_s3] sm:$0xff]  ;;  %v5164_v58 = vld [vmem:[%s7252_s6 + $0x50] sm:$0xff] }
   0x7   :  { %5656 = vmatprep.mubr.msk.f32.mxu1 %vm221_vm1, %v6516_v19  ;;  %v55_v50 = vld [vmem:[%s7251_s3 + $0x8] sm:$0xff]  ;;  %v62_v54 = vld [vmem:[%s7252_s6] sm:$0xff]  ;;  %v64_v60 = vld [vmem:[%s7252_s6 + $0x10] sm:$0xff] }
   0x8   :  { %v6561_v51 = vpack.c.bf16 %v55_v50, %v54_v49  ;;  %v63_v55 = vld [vmem:[%s7252_s6 + $0x8] sm:$0xff]  ;;  %v65_v61 = vld [vmem:[%s7252_s6 + $0x18] sm:$0xff]  ;;  %v5166_v0 = vld [vmem:[%s7252_s6 + $0x60] sm:$0xff] }
   0x9   :  { %6108 = vmatpush3.bf16.msra.mxu0 %v6105_v7  ;;  %104 = vperm.xlu0 %6339, %v53_v13   ;;  %v5163_v56 = vld [vmem:[%s7252_s6 + $0x48] sm:$0xff]  ;;  %v6578_v57 = vpack.c.bf16 %v63_v55, %v62_v54  ;;  %v5165_v62 = vld [vmem:[%s7252_s6 + $0x58] sm:$0xff]  ;;  %v6598_v63 = vpack.c.bf16 %v65_v61, %v64_v60  ;;  %v66_v2 = vld [vmem:[%s7252_s6 + $0x20] sm:$0xff]  ;;  %v7263_v60 = vmov 0.0  }
   0xa   :  { %6110 = vmatprep.subr.bf16.mxu0 %v6109_v12  ;;  %206 = vperm.xlu1 %6340, %v53_v13   ;;  %v6583_v59 = vpack.c.bf16 %v5164_v58, %v5163_v56  ;;  %v6603_v1 = vpack.c.bf16 %v5166_v0, %v5165_v62  ;;  %v5167_v5 = vld [vmem:[%s7252_s6 + $0x68] sm:$0xff]  ;;  %v5168_v7 = vld [vmem:[%s7252_s6 + $0x70] sm:$0xff]  ;;  %v5170_v14 = vld [vmem:[%s7252_s6 + $0x80] sm:$0xff]  ;;  %v7265_v58 = vmov 0.0|0.0  }
   0xb   :  { %v6623_v8 = vpack.c.bf16 %v5168_v7, %v5167_v5  ;;  %v68_v9 = vld [vmem:[%s7252_s6 + $0x30] sm:$0xff]  ;;  %v5196_v7 = vld [vmem:[%s7254_s9 + $0x18] sm:$0xff] }
   0xd   :  { %6112 = vmatpush3.bf16.msra.mxu0 %v6109_v12  ;;  %6341 = vset.pattern.permute.xlu0 %v6382_v17  ;;  %v5169_v12 = vld [vmem:[%s7252_s6 + $0x78] sm:$0xff] }
   0xe   :  { %6114 = vmatprep.subr.bf16.mxu0 %v6113_v16  ;;  %6342 = vset.pattern.permute.xlu1 %v6382_v17  ;;  %v6643_v15 = vpack.c.bf16 %v5170_v14, %v5169_v12  ;;  %v804_v12 = vld [vmem:[%s7254_s9 + $0x8] sm:$0xff] }
   0xf   :  { %216 = vperm.xlu1 %6342, %v53_v13   ;;  %212 = vperm.xlu0 %6341, %v52_v11   ;;  %v69_v11 = vld [vmem:[%s7252_s6 + $0x38] sm:$0xff] }
  0x10   :  { %v6638_v13 = vpack.c.bf16 %v69_v11, %v68_v9  ;;  %v5197_v9 = vld [vmem:[%s7254_s9 + $0x20] sm:$0xff] }
  0x11   :  { %6116 = vmatpush3.bf16.msra.mxu0 %v6113_v16  ;;  %v6652_v16 = vld [vmem:[%s7252_s6 + $0x40] sm:$0xff] }
  0x12   :  { %6146 = vmatprep.subr.bf16.mxu0 %v6583_v59  ;;  %v803_v11 = vld [vmem:[%s7254_s9] sm:$0xff] }
  0x13   :  { %6344 = vset.pattern.permute.xlu0 %v6380_v3  ;;  %6343 = vset.pattern.permute.xlu1 %v6380_v3  ;;  %v67_v3 = vld [vmem:[%s7252_s6 + $0x28] sm:$0xff] }
  0x14   :  { %5650 = vmatmul.mubr.msk.f32.vlgmr.msra.gmra.mrb[0].mxu0 %vm107_vm0, %v6509_v18  ;;  %v6618_v6 = vpack.c.bf16 %v67_v3, %v66_v2 }
  0x15   :  { %6148 = vmatpush3.bf16.msra.mxu0 %v6583_v59 }
  0x16   :  { %6150 = vmatprep.subr.bf16.mxu0 %v6603_v1 }
  0x19   :  { %6152 = vmatpush3.bf16.msra.mxu0 %v6603_v1 }
  0x1a   :  { %6154 = vmatprep.subr.bf16.mxu0 %v6623_v8 }
  0x1d   :  { %6156 = vmatpush3.bf16.msra.mxu0 %v6623_v8 }
  0x1e   :  { %6158 = vmatprep.subr.bf16.mxu0 %v6643_v15 }
  0x21   :  { %6160 = vmatpush3.bf16.msra.mxu0 %v6643_v15 }
  0x84   :  { %v6520_v20 = vpop.permute.xlu0 %99 }
  0x85   :  { %v6526_v30 = vpop.permute.xlu1 %202 }
  0x88   :  { %v6522_v21 = vpop.permute.xlu0 %104 }
  0x89   :  { %v6528_v31 = vpop.permute.xlu1 %206 }
  0x8e   :  { %v6530_v37 = vpop.permute.xlu1 %216  ;;  %v6533_v40 = vpop.permute.xlu0 %212 }
  0xe7   :  { %v5651_v22 = vpop.f32.mrb[0].mxu0 }
  0xe8   :  { %v186_v23 = vadd.f32 %v5651_v22, %v6522_v21  ;;  %v180_v24 = vpop.f32.mrb[1].mxu0  ;;  %v6657_v22 = vld [vmem:[%s7252_s6 + $0x88] sm:$0xff] }
  0xe9   :  { %v181_v25 = vadd.f32 %v180_v24, %v6520_v20  ;;  %5710 = vmatprep.subr.mxu0 %v6657_v22 }
  0xea   :  { %v192_v26 = vmin.f32 %v186_v23, 0.0  ;;  %vm190_vm2 = vcmp.gt.f32.partialorder %v186_v23, 0.0  ;;  %5711 = vmatpush3.msra.mxu0 %v6657_v22 }
  0xeb   :  { %v191_v27 = vmin.f32 %v181_v25, 0.0  ;;  %vm189_vm3 = vcmp.gt.f32.partialorder %v181_v25, 0.0  ;;  %6164 = vmatprep.subr.bf16.mxu0 %v7265_v58 }
  0xec   :  { %v195_v28 = vmul.f32 1.442695, %v192_v26  ;;  %v61_v26 = vld [vmem:[%s7253_s5] sm:$0x7] }
  0xed   :  { %v193_v29 = vmul.f32 1.442695, %v191_v27 }
  0xee   :  { %6348 = vpow2.f32 %v195_v28 }
  0xef   :  { %6350 = vpow2.f32 %v193_v29 }
  0xf8   :  { %v6349_v32 = vpop.eup %6348 }
  0xf9   :  { %v6351_v33 = vpop.eup %6350  ;;  %v5177_v34 = vadd.f32 -1.0, %v6349_v32 }
  0xfa   :  { %v5176_v35 = vadd.f32 -1.0, %v6351_v33 }
  0xfb   :  { %v200_v36 = vsel %vm190_vm2, %v186_v23, %v5177_v34  ;;  %v465_v23 = vlaneseq }
  0xfc   :  { %v199_v38 = vsel %vm189_vm3, %v181_v25, %v5176_v35  ;;  %v210_v39 = vmul.f32 %v6528_v31, %v200_v36 }
  0xfd   :  { %v209_v41 = vmul.f32 %v6526_v30, %v199_v38  ;;  %v466_v24 = vshrl.u32 %v465_v23, 7  ;;  %v6703_v23 = vld [vmem:[%s7255_s7] sm:$0xf] }
  0xfe   :  { %v220_v42 = vadd.f32 %v6530_v37, %v210_v39 }
  0xff   :  { %v219_v45 = vadd.f32 %v6533_v40, %v209_v41  ;;  %v467_v25 = vsub.s32 0, %v466_v24  ;;  %v485_v39 = vsub.s32 1, %v466_v24  ;;  %v491_v41 = vsub.s32 2, %v466_v24  ;;  %v6708_v24 = vld [vmem:[%s7255_s7 + $0x4] sm:$0xf] }
 0x101   :  { %v6117_v46 = vpack.c.bf16 %v220_v42, %v219_v45  ;;  %v6666_v27 = vrot.slane %v61_v26, %v467_v25  ;;  %v6670_v43 = vrot.slane %v61_v26, %v485_v39  ;;  %v6672_v50 = vrot.slane %v61_v26, %v491_v41 }
 0x102   :  { %v6710_v25 = vpack.c.bf16 %v5197_v9, %v5196_v7  ;;  %v6712_v26 = vpack.c.bf16 %v804_v12, %v803_v11  ;;  %v6819_v11 = vld [vmem:[%s7256_s8 + $0x28] sm:$0xff]  ;;  %v6824_v12 = vld [vmem:[%s7256_s8 + $0x30] sm:$0xff] }
 0x103   :  { %6118 = vmatprep.subr.bf16.mxu1 %v6117_v46 }
 0x104   :  { %6120 = vmatpush3.bf16.msra.mxu1 %v6117_v46 }
 0x105   :  { %6122 = vmatprep.subr.bf16.mxu1 %v6544_v47 }
 0x107   :  { %5657 = vmatmul.mubr.msk.f32.vlgmr.msra.gmra.mrb[0].mxu1 %vm221_vm1, %v6549_v48 }
 0x108   :  { %6124 = vmatpush3.bf16.msra.mxu1 %v6544_v47 }
 0x109   :  { %6126 = vmatprep.subr.bf16.mxu1 %v6561_v51 }
 0x1da   :  { %v5658_v52 = vpop.f32.mrb[0].mxu1 }
 0x1db   :  { %v294_v53 = vpop.f32.mrb[1].mxu1 }
 0x1dc   :  { %5663 = vmatprep.mubr.msk.f32.mxu1 %vm221_vm1, %v294_v53 }
 0x1dd   :  { %5664 = vmatmul.mubr.msk.f32.vlgmr.msra.gmra.mrb[2].mxu1 %vm221_vm1, %v5658_v52 }
 0x1de   :  { %5670 = vmatprep.mubr.msk.f32.mxu1 %vm221_vm1, %v219_v45  ;;  %6128 = vmatpush3.bf16.msra.mxu1 %v6561_v51 }
 0x1df   :  { %6130 = vmatprep.subr.bf16.mxu1 %v6578_v57 }
 0x1e5   :  { %5671 = vmatmul.mubr.msk.f32.vlgmr.msra.gmra.mrb[2].mxu1 %vm221_vm1, %v220_v42 }
 0x1e6   :  { %6132 = vmatpush3.bf16.msra.mxu1 %v6578_v57 }
 0x1e7   :  { %6134 = vmatprep.subr.bf16.mxu1 %v6598_v63 }
 0x1ea   :  { %6136 = vmatpush3.bf16.msra.mxu1 %v6598_v63 }
 0x1eb   :  { %6138 = vmatprep.subr.bf16.mxu1 %v6618_v6 }
 0x1ee   :  { %6140 = vmatpush3.bf16.msra.mxu1 %v6618_v6 }
 0x1ef   :  { %6142 = vmatprep.subr.bf16.mxu1 %v6638_v13 }
 0x1f2   :  { %6144 = vmatpush3.bf16.msra.mxu1 %v6638_v13 }
 0x1f3   :  { %5689 = vmatprep.subr.mxu1 %v6652_v16 }
 0x1f6   :  { %5690 = vmatpush3.msra.mxu1 %v6652_v16 }
 0x1f7   :  { %6161 = vmatprep.subr.bf16.mxu1 %v7265_v58 }
 0x2b8   :  { %v5672_v28 = vpop.f32.mrb[2].mxu1 }
 0x2b9   :  { %v470_v29 = vadd.f32 %v5672_v28, %v6666_v27  ;;  %v456_v32 = vpop.f32.mrb[3].mxu1  ;;  %v5198_v28 = vld [vmem:[%s7254_s9 + $0x28] sm:$0xf] }
 0x2ba   :  { %v469_v33 = vadd.f32 %v6666_v27, %v456_v32  ;;  %v5209_v32 = vld [vmem:[%s7254_s9 + $0x30] sm:$0xff] }
 0x2bb   :  { %v474_v34 = vmin.f32 %v470_v29, 0.0  ;;  %vm472_vm4 = vcmp.gt.f32.partialorder %v470_v29, 0.0 }
 0x2bc   :  { %v473_v35 = vmin.f32 %v469_v33, 0.0  ;;  %vm471_vm5 = vcmp.gt.f32.partialorder %v469_v33, 0.0 }
 0x2bd   :  { %v477_v36 = vmul.f32 1.442695, %v474_v34 }
 0x2be   :  { %v475_v38 = vmul.f32 1.442695, %v473_v35 }
 0x2bf   :  { %6352 = vpow2.f32 %v477_v36 }
 0x2c0   :  { %6354 = vpow2.f32 %v475_v38 }
 0x2c9   :  { %v6353_v42 = vpop.eup %6352 }
 0x2ca   :  { %v6355_v44 = vpop.eup %6354  ;;  %v5185_v45 = vadd.f32 -1.0, %v6353_v42  ;;  %v5219_v42 = vld [vmem:[%s7254_s9 + $0x48] sm:$0xff] }
 0x2cb   :  { %v5184_v46 = vadd.f32 -1.0, %v6355_v44  ;;  %v5220_v44 = vld [vmem:[%s7254_s9 + $0x50] sm:$0xff] }
 0x2cc   :  { %v482_v49 = vsel %vm472_vm4, %v470_v29, %v5185_v45  ;;  %v805_v29 = vld [vmem:[%s7254_s9 + $0x10] sm:$0xf]  ;;  %v5211_v45 = vld [vmem:[%s7254_s9 + $0x40] sm:$0xf] }
 0x2cd   :  { %v488_v52 = vmul.f32 %v6670_v43, %v482_v49  ;;  %v481_v53 = vsel %vm471_vm5, %v469_v33, %v5184_v46  ;;  %v5210_v33 = vld [vmem:[%s7254_s9 + $0x38] sm:$0xff]  ;;  %v6760_v46 = vpack.c.bf16 %v5220_v44, %v5219_v42 }
 0x2ce   :  { %v487_v54 = vmul.f32 %v6670_v43, %v481_v53  ;;  %v6743_v36 = vpack.c.bf16 %v5210_v33, %v5209_v32  ;;  %v5221_v49 = vld [vmem:[%s7254_s9 + $0x58] sm:$0xf] }
 0x2cf   :  { %v494_v56 = vadd.f32 %v6672_v50, %v488_v52  ;;  %v6777_v52 = vld [vmem:[%s7256_s8 + $0x10] sm:$0xff] }
 0x2d0   :  { %v493_v55 = vadd.f32 %v6672_v50, %v487_v54 }
 0x2d2   :  { %5691 = vmatprep.mubr.msk.f32.mxu1 %vm495_vm6, %v493_v55  ;;  %5712 = vmatprep.mubr.msk.f32.mxu0 %vm495_vm6, %v493_v55  ;;  %v6784_v55 = vld [vmem:[%s7256_s8 + $0x18] sm:$0xff] }
 0x2d3   :  { %5692 = vmatmul.mubr.msk.f32.vlgmr.msra.gmra.mrb[4].mxu1 %vm495_vm6, %v494_v56  ;;  %5713 = vmatmul.mubr.msk.f32.vlgmr.msra.gmra.mrb[2].mxu0 %vm495_vm6, %v494_v56 }
 0x2d4   :  { %5719 = vmatprep.mubr.msk.f32.mxu1 %vm6384_vm7, %v7263_v60  ;;  %5726 = vmatprep.mubr.msk.f32.mxu0 %vm6384_vm7, %v7263_v60 }
 0x3a6   :  { %v5693_v61 = vpop.f32.mrb[4].mxu1  ;;  %v5714_v62 = vpop.f32.mrb[2].mxu0 }
 0x3a7   :  { %v653_v0 = vmax.f32 %v5693_v61, %v5714_v62  ;;  %v568_v2 = vpop.f32.mrb[5].mxu1  ;;  %v643_v3 = vpop.f32.mrb[3].mxu0  ;;  %v6790_v62 = vld [vmem:[%s7256_s8] sm:$0xff] }
 0x3a8   :  { %v652_v5 = vmax.f32 %v568_v2, %v643_v3  ;;  %v6803_v3 = vld [vmem:[%s7256_s8 + $0x8] sm:$0xff] }
 0x3aa   :  { %v6162_v14 = vpack.c.bf16 %v653_v0, %v652_v5  ;;  %v6808_v5 = vld [vmem:[%s7256_s8 + $0x20] sm:$0xff] }
 0x3ac   :  { %6163 = vmatpush3.bf16.msra.mxu1 %v6162_v14  ;;  %6166 = vmatpush3.bf16.msra.mxu0 %v6162_v14  ;;  %v6834_v14 = vld [vmem:[%s7256_s8 + $0x38] sm:$0xff] }
 0x3ad   :  { %6170 = vmatprep.subr.bf16.mxu0 %v7265_v58  ;;  %6167 = vmatprep.subr.bf16.mxu1 %v7265_v58 }
 0x3af   :  { %5720 = vmatmul.mubr.msk.f32.vlgmr.msra.gmra.mrb[6].mxu1 %vm221_vm1, %v6703_v23  ;;  %5727 = vmatmul.mubr.msk.f32.vlgmr.msra.gmra.mrb[4].mxu0 %vm221_vm1, %v6708_v24 }
 0x3b0   :  { %6172 = vmatpush3.bf16.msra.mxu0 %v6710_v25  ;;  %6169 = vmatpush3.bf16.msra.mxu1 %v6712_v26 }
 0x3b1   :  { %5742 = vmatprep.subr.mxu0 %v7263_v60  ;;  %5733 = vmatprep.subr.mxu1 %v7263_v60 }
 0x3b2   :  { %5735 = vmatprep.mubr.msk.f32.mxu1 %vm6384_vm7, %v7263_v60  ;;  %5744 = vmatprep.mubr.msk.f32.mxu0 %vm6384_vm7, %v7263_v60 }
 0x3b4   :  { %5743 = vmatpush3.msk.msra.mxu0 %vm810_vm8, %v5198_v28  ;;  %5734 = vmatpush3.msk.msra.mxu1 %vm810_vm8, %v805_v29  ;;  %v1467_v28 = vld [vmem:[%s7257_s11] sm:$0x1f]  ;;  %v5234_v29 = vld [vmem:[%s7257_s11 + $0x8] sm:$0x1f] }
 0x3b5   :  { %6173 = vmatprep.subr.bf16.mxu0 %v7265_v58 }
 0x482   :  { %v723_v34 = vpop.f32.mrb[6].mxu1  ;;  %v796_v35 = vpop.f32.mrb[4].mxu0 }
 0x483   :  { %v800_v38 = vmax.f32 %v723_v34, %v796_v35  ;;  %v5721_v39 = vpop.f32.mrb[7].mxu1  ;;  %v5728_v41 = vpop.f32.mrb[5].mxu0  ;;  %v5242_v34 = vld [vmem:[%s7257_s11 + $0x10] sm:$0x1f]  ;;  %v5250_v35 = vld [vmem:[%s7257_s11 + $0x18] sm:$0x1f] }
 0x484   :  { %v85_v39 = vld [vmem:[%s7259_s12 + $0x8] sm:$0xff]  ;;  %v84_v41 = vld [vmem:[%s7259_s12] sm:$0xff] }
 0x485   :  { %5736 = vmatmul.mubr.msk.f32.vlgmr.msra.gmra.mrb[8].mxu1 %vm806_vm9, %v800_v38  ;;  %5745 = vmatmul.mubr.msk.f32.vlgmr.msra.gmra.mrb[6].mxu0 %vm806_vm9, %v800_v38 }
 0x486   :  { %6175 = vmatpush3.bf16.msra.mxu0 %v6743_v36  ;;  %5763 = vmatprep.mubr.msk.f32.mxu0 %vm6384_vm7, %v7263_v60 }
 0x487   :  { %5761 = vmatprep.subr.mxu0 %v7263_v60  ;;  %5749 = vmatprep.mubr.msk.f32.mxu1 %vm964_vm10, %v6777_v52 }
 0x488   :  { %1642 = vperm.xlu0 %6344, %v85_v39   ;;  %1637 = vperm.xlu1 %6343, %v84_v41  }
 0x48a   :  { %5762 = vmatpush3.msk.msra.mxu0 %vm810_vm8, %v5211_v45 }
 0x48b   :  { %5764 = vmatmul.mubr.msk.f32.vlgmr.msra.gmra.mrb[8].mxu0 %vm806_vm9, %v800_v38  ;;  %6176 = vmatprep.subr.bf16.mxu0 %v7265_v58 }
 0x48c   :  { %6178 = vmatpush3.bf16.msra.mxu0 %v6760_v46  ;;  %5777 = vmatprep.mubr.msk.f32.mxu0 %vm6384_vm7, %v7263_v60 }
 0x48d   :  { %5775 = vmatprep.subr.mxu0 %v7263_v60  ;;  %6345 = vset.pattern.permute.xlu1 %v6381_v4 }
 0x48e   :  { %6346 = vset.pattern.permute.xlu0 %v6382_v17  ;;  %2158 = vperm.xlu1 %6345, %v84_v41  }
 0x48f   :  { %2168 = vperm.xlu0 %6346, %v84_v41   ;;  %v5265_v41 = vld [vmem:[%s7260_s13 + $0x10] sm:$0x1f] }
 0x490   :  { %5776 = vmatpush3.msk.msra.mxu0 %vm810_vm8, %v5221_v49 }
 0x491   :  { %5778 = vmatmul.mubr.msk.f32.vlgmr.msra.gmra.mrb[10].mxu0 %vm806_vm9, %v800_v38  ;;  %5785 = vmatprep.subr.msk.mxu0 %vm1475_vm11, %v1467_v28  ;;  %v6869_v38 = vld [vmem:[%s7258_s10] sm:$0xff] }
 0x492   :  { %5786 = vmatpush3.msk.msra.mxu0 %vm1475_vm11, %v1467_v28  ;;  %2162 = vperm.xlu1 %6345, %v85_v39  }
 0x493   :  { %5797 = vmatprep.subr.msk.mxu0 %vm1475_vm11, %v5234_v29 }
 0x496   :  { %6347 = vset.pattern.permute.xlu1 %v6382_v17 }
 0x497   :  { %2172 = vperm.xlu1 %6347, %v85_v39   ;;  %v5261_v39 = vld [vmem:[%s7260_s13 + $0x8] sm:$0x1f] }
 0x558   :  { %v880_v53 = vpop.f32.mrb[8].mxu1  ;;  %v960_v54 = vpop.f32.mrb[6].mxu0 }
 0x559   :  { %v5737_v56 = vpop.f32.mrb[9].mxu1  ;;  %v5746_v61 = vpop.f32.mrb[7].mxu0  ;;  %5747 = vmatprep.subr.msk.mxu1 %vm810_vm8, %v960_v54 }
 0x55a   :  { %5748 = vmatpush3.msk.msra.mxu1 %vm810_vm8, %v960_v54  ;;  %v6885_v54 = vld [vmem:[%s7258_s10 + $0x8] sm:$0xff]  ;;  %v6890_v56 = vld [vmem:[%s7258_s10 + $0x10] sm:$0xff] }
 0x55b   :  { %5750 = vmatmul.mubr.msk.f32.vlgmr.msra.gmra.mrb[10].mxu1 %vm964_vm10, %v6784_v55  ;;  %5752 = vmatprep.subr.msk.mxu1 %vm810_vm8, %v880_v53 }
 0x55c   :  { %5753 = vmatpush3.msk.msra.mxu1 %vm810_vm8, %v880_v53  ;;  %5754 = vmatprep.mubr.msk.f32.mxu1 %vm964_vm10, %v6790_v62 }
 0x55e   :  { %v1209_v0 = vpop.f32.mrb[8].mxu0 }
 0x55f   :  { %v5765_v2 = vpop.f32.mrb[9].mxu0  ;;  %5766 = vmatprep.subr.msk.mxu1 %vm810_vm8, %v1209_v0 }
 0x563   :  { %5755 = vmatmul.mubr.msk.f32.vlgmr.msra.gmra.mrb[10].mxu1 %vm964_vm10, %v6803_v3 }
 0x564   :  { %5767 = vmatpush3.msk.msra.mxu1 %vm810_vm8, %v1209_v0  ;;  %v1375_v7 = vpop.f32.mrb[10].mxu0  ;;  %5768 = vmatprep.mubr.msk.f32.mxu1 %vm964_vm10, %v6808_v5 }
 0x565   :  { %v5779_v9 = vpop.f32.mrb[11].mxu0  ;;  %5780 = vmatprep.subr.msk.mxu1 %vm810_vm8, %v1375_v7 }
 0x566   :  { %v6899_v9 = vld [vmem:[%s7258_s10 + $0x18] sm:$0xff] }
 0x56b   :  { %5769 = vmatmul.mubr.msk.f32.vlgmr.msra.gmra.mrb[10].mxu1 %vm964_vm10, %v6819_v11 }
 0x56c   :  { %5781 = vmatpush3.msk.msra.mxu1 %vm810_vm8, %v1375_v7  ;;  %5782 = vmatprep.mubr.msk.f32.mxu1 %vm964_vm10, %v6824_v12 }
 0x573   :  { %5783 = vmatmul.mubr.msk.f32.vlgmr.msra.gmra.mrb[10].mxu1 %vm964_vm10, %v6834_v14 }
 0x574   :  { %5794 = vmatprep.mubr.msk.f32.mxu1 %vm221_vm1, %v6869_v38 }
 0x646   :  { %v5784_v32 = vpop.f32.mrb[10].mxu1 }
 0x647   :  { %v1454_v33 = vpop.f32.mrb[11].mxu1 }
 0x648   :  { %5787 = vmatprep.mubr.msk.f32.mxu0 %vm1468_vm12, %v1454_v33 }
 0x649   :  { %5788 = vmatmul.mubr.msk.f32.vlgmr.msra.gmra.mrb[12].mxu0 %vm1468_vm12, %v5784_v32 }
 0x64a   :  { %5799 = vmatprep.mubr.msk.f32.mxu0 %vm1468_vm12, %v1454_v33  ;;  %5798 = vmatpush3.msk.msra.mxu0 %vm1475_vm11, %v5234_v29  ;;  %v6904_v29 = vld [vmem:[%s7258_s10 + $0x20] sm:$0xff] }
 0x64b   :  { %5809 = vmatprep.subr.msk.mxu0 %vm1475_vm11, %v5242_v34 }
 0x64d   :  { %5800 = vmatmul.mubr.msk.f32.vlgmr.msra.gmra.mrb[14].mxu0 %vm1468_vm12, %v5784_v32 }
 0x64e   :  { %5811 = vmatprep.mubr.msk.f32.mxu0 %vm1468_vm12, %v1454_v33  ;;  %5810 = vmatpush3.msk.msra.mxu0 %vm1475_vm11, %v5242_v34  ;;  %v6927_v34 = vld [vmem:[%s7258_s10 + $0x38] sm:$0xff] }
 0x64f   :  { %5821 = vmatprep.subr.msk.mxu0 %vm1475_vm11, %v5250_v35  ;;  %7274 = vst [vmem:[#allocation2_spill] sm:$0xff] %v6927_v34 }
 0x651   :  { %5812 = vmatmul.mubr.msk.f32.vlgmr.msra.gmra.mrb[16].mxu0 %vm1468_vm12, %v5784_v32 }
 0x652   :  { %5823 = vmatprep.mubr.msk.f32.mxu0 %vm1468_vm12, %v1454_v33  ;;  %5822 = vmatpush3.msk.msra.mxu0 %vm1475_vm11, %v5250_v35  ;;  %v6918_v33 = vld [vmem:[%s7258_s10 + $0x30] sm:$0xff]  ;;  %v2177_v35 = vld [vmem:[%s7260_s13] sm:$0x1f] }
 0x653   :  { %5833 = vmatprep.subr.msk.mxu0 %vm1475_vm11, %v2177_v35 }
 0x655   :  { %5824 = vmatmul.mubr.msk.f32.vlgmr.msra.gmra.mrb[18].mxu0 %vm1468_vm12, %v5784_v32  ;;  %v6913_v32 = vld [vmem:[%s7258_s10 + $0x28] sm:$0xff] }
 0x656   :  { %5834 = vmatpush3.msk.msra.mxu0 %vm1475_vm11, %v2177_v35 }
 0x657   :  { %5843 = vmatprep.subr.msk.mxu0 %vm1475_vm11, %v5265_v41 }
 0x71c   :  { %v5789_v42 = vpop.f32.mrb[12].mxu0 }
 0x71d   :  { %v1545_v44 = vpop.f32.mrb[13].mxu0 }
 0x71e   :  { %v6179_v45 = vpack.c.bf16 %v5789_v42, %v1545_v44  ;;  %v5269_v42 = vld [vmem:[%s7260_s13 + $0x18] sm:$0x1f]  ;;  %v6949_v44 = vpop.permute.xlu0 %1642 }
 0x71f   :  { %7275 = vst [vmem:[#allocation3_spill] sm:$0xff] %v6949_v44 }
 0x720   :  { %6180 = vmatprep.subr.bf16.mxu1 %v6179_v45  ;;  %v5801_v49 = vpop.f32.mrb[14].mxu0 }
 0x721   :  { %6182 = vmatpush3.bf16.msra.mxu1 %v6179_v45  ;;  %v1721_v53 = vpop.f32.mrb[15].mxu0  ;;  %v6951_v45 = vpop.permute.xlu1 %1637 }
 0x722   :  { %v6183_v4 = vpack.c.bf16 %v5801_v49, %v1721_v53  ;;  %7276 = vst [vmem:[#allocation4_spill] sm:$0xff] %v6951_v45 }
 0x724   :  { %5795 = vmatmul.mubr.msk.f32.vlgmr.msra.gmra.mrb[12].mxu1 %vm221_vm1, %v6885_v54  ;;  %6184 = vmatprep.subr.bf16.mxu1 %v6183_v4  ;;  %v5813_v17 = vpop.f32.mrb[16].mxu0 }
 0x725   :  { %6186 = vmatpush3.bf16.msra.mxu1 %v6183_v4  ;;  %v1887_v61 = vpop.f32.mrb[17].mxu0  ;;  %5806 = vmatprep.mubr.msk.f32.mxu1 %vm221_vm1, %v6890_v56 }
 0x726   :  { %v6187_v0 = vpack.c.bf16 %v5813_v17, %v1887_v61 }
 0x728   :  { %6188 = vmatprep.subr.bf16.mxu1 %v6187_v0  ;;  %v5825_v2 = vpop.f32.mrb[18].mxu0 }
 0x729   :  { %v2053_v7 = vpop.f32.mrb[19].mxu0 }
 0x72a   :  { %v6191_v28 = vpack.c.bf16 %v5825_v2, %v2053_v7 }
 0x72c   :  { %5807 = vmatmul.mubr.msk.f32.vlgmr.msra.gmra.mrb[12].mxu1 %vm221_vm1, %v6899_v9 }
 0x72d   :  { %6190 = vmatpush3.bf16.msra.mxu1 %v6187_v0  ;;  %5818 = vmatprep.mubr.msk.f32.mxu1 %vm221_vm1, %v6904_v29 }
 0x72e   :  { %6192 = vmatprep.subr.bf16.mxu1 %v6191_v28 }
 0x734   :  { %5819 = vmatmul.mubr.msk.f32.vlgmr.msra.gmra.mrb[12].mxu1 %vm221_vm1, %v6913_v32 }
 0x735   :  { %6194 = vmatpush3.bf16.msra.mxu1 %v6191_v28  ;;  %5830 = vmatprep.mubr.msk.f32.mxu1 %vm221_vm1, %v6918_v33  ;;  %v6955_v28 = vpop.permute.xlu1 %2158 }
 0x736   :  { %5838 = vmatprep.subr.msk.mxu1 %vm1475_vm11, %v5261_v39  ;;  %7277 = vst [vmem:[#allocation5_spill] sm:$0xff] %v6955_v28 }
 0x739   :  { %v6957_v60 = vpop.permute.xlu1 %2162 }
 0x73a   :  { %7278 = vst [vmem:[#allocation6_spill] sm:$0xff] %v6957_v60 }
 0x73c   :  { %5831 = vmatmul.mubr.msk.f32.vlgmr.msra.gmra.mrb[12].mxu1 %vm221_vm1, %v6927_v34 }
 0x73d   :  { %5839 = vmatpush3.msk.msra.mxu1 %vm1475_vm11, %v5261_v39 }
 0x73e   :  { %5848 = vmatprep.subr.msk.mxu1 %vm1475_vm11, %v5269_v42 }
 0x80f   :  { %v5832_v49 = vpop.f32.mrb[12].mxu1 }
 0x810   :  { %v6301_v53 = vadd.f32 %v5832_v49, %v6949_v44  ;;  %v2134_v4 = vpop.f32.mrb[13].mxu1 }
 0x811   :  { %v6302_v17 = vadd.f32 %v2134_v4, %v6951_v45  ;;  %v6960_v45 = vpop.permute.xlu0 %2168 }
 0x812   :  { %v2148_v61 = vmin.f32 %v6301_v53, 0.0  ;;  %vm2146_vm13 = vcmp.gt.f32.partialorder %v6301_v53, 0.0  ;;  %7279 = vst [vmem:[#allocation7_spill] sm:$0xff] %v6960_v45 }
 0x813   :  { %v2147_v0 = vmin.f32 %v6302_v17, 0.0  ;;  %vm2145_vm14 = vcmp.gt.f32.partialorder %v6302_v17, 0.0 }
 0x814   :  { %v2151_v2 = vmul.f32 1.442695, %v2148_v61 }
 0x815   :  { %v2149_v7 = vmul.f32 1.442695, %v2147_v0  ;;  %v6963_v0 = vpop.permute.xlu1 %2172 }
 0x816   :  { %6356 = vpow2.f32 %v2151_v2  ;;  %7280 = vst [vmem:[#allocation8_spill] sm:$0xff] %v6963_v0 }
 0x817   :  { %6358 = vpow2.f32 %v2149_v7 }
 0x820   :  { %v6357_v35 = vpop.eup %6356 }
 0x821   :  { %v6359_v39 = vpop.eup %6358  ;;  %v5257_v58 = vadd.f32 -1.0, %v6357_v35 }
 0x822   :  { %v5256_v34 = vadd.f32 -1.0, %v6359_v39 }
 0x823   :  { %v2156_v49 = vsel %vm2146_vm13, %v6301_v53, %v5257_v58  ;;  %v7281_v58 = vmov 0.0|0.0  }
 0x824   :  { %v2155_v44 = vsel %vm2145_vm14, %v6302_v17, %v5256_v34  ;;  %v2166_v4 = vmul.f32 %v6957_v60, %v2156_v49  ;;  %v7282_v34 = vmov 0.0  }
 0x825   :  { %v2165_v61 = vmul.f32 %v6955_v28, %v2155_v44 }
 0x826   :  { %v2176_v7 = vadd.f32 %v6963_v0, %v2166_v4 }
 0x827   :  { %v2175_v2 = vadd.f32 %v6960_v45, %v2165_v61  ;;  %v5276_v45 = vld [vmem:[%s7247_s0 + $0x48] sm:$0xff] }
 0x829   :  { %5835 = vmatprep.mubr.msk.f32.mxu0 %vm1468_vm12, %v2175_v2  ;;  %5840 = vmatprep.mubr.msk.f32.mxu1 %vm1468_vm12, %v2175_v2 }
 0x82a   :  { %5836 = vmatmul.mubr.msk.f32.vlgmr.msra.gmra.mrb[20].mxu0 %vm1468_vm12, %v2176_v7  ;;  %5841 = vmatmul.mubr.msk.f32.vlgmr.msra.gmra.mrb[14].mxu1 %vm1468_vm12, %v2176_v7 }
 0x82b   :  { %5845 = vmatprep.mubr.msk.f32.mxu0 %vm1468_vm12, %v2175_v2  ;;  %5850 = vmatprep.mubr.msk.f32.mxu1 %vm1468_vm12, %v2175_v2 }
 0x82c   :  { %5844 = vmatpush3.msk.msra.mxu0 %vm1475_vm11, %v5265_v41  ;;  %5849 = vmatpush3.msk.msra.mxu1 %vm1475_vm11, %v5269_v42 }
 0x82d   :  { %6195 = vmatprep.subr.bf16.mxu0 %v7281_v58  ;;  %6198 = vmatprep.subr.bf16.mxu1 %v7281_v58 }
 0x82e   :  { %5846 = vmatmul.mubr.msk.f32.vlgmr.msra.gmra.mrb[22].mxu0 %vm1468_vm12, %v2176_v7  ;;  %5851 = vmatmul.mubr.msk.f32.vlgmr.msra.gmra.mrb[16].mxu1 %vm1468_vm12, %v2176_v7  ;;  %v5275_v7 = vld [vmem:[%s7247_s0 + $0x40] sm:$0xff] }
 0x82f   :  { %5857 = vmatprep.mubr.msk.f32.mxu0 %vm6384_vm7, %v7282_v34  ;;  %5864 = vmatprep.mubr.msk.f32.mxu1 %vm6384_vm7, %v7282_v34 }
 0x8fd   :  { %v5837_v44 = vpop.f32.mrb[20].mxu0  ;;  %v5842_v53 = vpop.f32.mrb[14].mxu1 }
 0x8fe   :  { %v2343_v17 = vmax.f32 %v5837_v44, %v5842_v53  ;;  %v2253_v41 = vpop.f32.mrb[21].mxu0  ;;  %v2333_v35 = vpop.f32.mrb[15].mxu1  ;;  %v6201_v44 = vpack.c.bf16 %v5276_v45, %v5275_v7  ;;  %v7003_v45 = vld [vmem:[%s7261_s14 + $0x8] sm:$0xff] }
 0x8ff   :  { %v2342_v42 = vmax.f32 %v2253_v41, %v2333_v35  ;;  %v5277_v41 = vld [vmem:[%s7247_s0 + $0x50] sm:$0xff]  ;;  %v6998_v35 = vld [vmem:[%s7261_s14] sm:$0xff] }
 0x901   :  { %v5847_v39 = vpop.f32.mrb[22].mxu0  ;;  %v5852_v49 = vpop.f32.mrb[16].mxu1 }
 0x902   :  { %v2425_v4 = vmax.f32 %v2343_v17, %v5847_v39  ;;  %v2415_v61 = vpop.f32.mrb[23].mxu0  ;;  %v2497_v2 = vpop.f32.mrb[17].mxu1  ;;  %v5278_v17 = vld [vmem:[%s7247_s0 + $0x58] sm:$0xff]  ;;  %v5281_v39 = vld [vmem:[%s7247_s0 + $0x70] sm:$0xff] }
 0x903   :  { %v2424_v0 = vmax.f32 %v2342_v42, %v2415_v61 }
 0x904   :  { %v2507_v28 = vmax.f32 %v2425_v4, %v5852_v49  ;;  %v5282_v49 = vld [vmem:[%s7247_s0 + $0x78] sm:$0xff] }
 0x905   :  { %v2506_v60 = vmax.f32 %v2424_v0, %v2497_v2  ;;  %v5280_v0 = vld [vmem:[%s7247_s0 + $0x68] sm:$0xff]  ;;  %v6213_v4 = vpack.c.bf16 %v5282_v49, %v5281_v39 }
 0x907   :  { %v6196_v53 = vpack.c.bf16 %v2507_v28, %v2506_v60  ;;  %v6205_v60 = vpack.c.bf16 %v5278_v17, %v5277_v41  ;;  %v5279_v28 = vld [vmem:[%s7247_s0 + $0x60] sm:$0xff] }
 0x908   :  { %v6209_v42 = vpack.c.bf16 %v5280_v0, %v5279_v28 }
 0x909   :  { %6197 = vmatpush3.bf16.msra.mxu0 %v6196_v53  ;;  %6200 = vmatpush3.bf16.msra.mxu1 %v6196_v53 }
 0x90a   :  { %6202 = vmatprep.subr.bf16.mxu0 %v6201_v44 }
 0x90c   :  { %5858 = vmatmul.mubr.msk.f32.vlgmr.msra.gmra.mrb[24].mxu0 %vm221_vm1, %v6998_v35  ;;  %5865 = vmatmul.mubr.msk.f32.vlgmr.msra.gmra.mrb[18].mxu1 %vm221_vm1, %v7003_v45 }
 0x90d   :  { %6204 = vmatpush3.bf16.msra.mxu0 %v6201_v44  ;;  %5883 = vmatprep.mubr.msk.f32.mxu0 %vm107_vm0, %v6488_v10 }
 0x90e   :  { %6206 = vmatprep.subr.bf16.mxu0 %v6205_v60  ;;  %5890 = vmatprep.mubr.msk.f32.mxu1 %vm221_vm1, %v6516_v19 }
 0x911   :  { %6208 = vmatpush3.bf16.msra.mxu0 %v6205_v60 }
 0x912   :  { %6210 = vmatprep.subr.bf16.mxu0 %v6209_v42 }
 0x915   :  { %6212 = vmatpush3.bf16.msra.mxu0 %v6209_v42 }
 0x916   :  { %6214 = vmatprep.subr.bf16.mxu0 %v6213_v4 }
 0x919   :  { %6216 = vmatpush3.bf16.msra.mxu0 %v6213_v4 }
 0x91a   :  { %6246 = vmatprep.subr.bf16.mxu0 %v6583_v59 }
 0x91c   :  { %5884 = vmatmul.mubr.msk.f32.vlgmr.msra.gmra.mrb[26].mxu0 %vm107_vm0, %v6509_v18 }
 0x91d   :  { %6248 = vmatpush3.bf16.msra.mxu0 %v6583_v59 }
 0x91e   :  { %6250 = vmatprep.subr.bf16.mxu0 %v6603_v1 }
 0x921   :  { %6252 = vmatpush3.bf16.msra.mxu0 %v6603_v1 }
 0x922   :  { %6254 = vmatprep.subr.bf16.mxu0 %v6623_v8 }
 0x925   :  { %6256 = vmatpush3.bf16.msra.mxu0 %v6623_v8 }
 0x926   :  { %6258 = vmatprep.subr.bf16.mxu0 %v6643_v15 }
 0x929   :  { %6260 = vmatpush3.bf16.msra.mxu0 %v6643_v15 }
 0x92a   :  { %5944 = vmatprep.subr.mxu0 %v6657_v22 }
 0x92d   :  { %5945 = vmatpush3.msra.mxu0 %v6657_v22 }
 0x92e   :  { %6264 = vmatprep.subr.bf16.mxu0 %v7281_v58 }
 0x9df   :  { %v2577_v10 = vpop.f32.mrb[24].mxu0  ;;  %v2650_v18 = vpop.f32.mrb[18].mxu1 }
 0x9e0   :  { %v2654_v19 = vmax.f32 %v2577_v10, %v2650_v18  ;;  %v5859_v59 = vpop.f32.mrb[25].mxu0  ;;  %v5866_v1 = vpop.f32.mrb[19].mxu1 }
 0x9e2   :  { %v2656_v61 = vsel %vm2655_vm15, %v2654_v19, -inf }
 0x9e3   :  { %v2657_v2 = vrot.slane %v2656_v61, 4 }
 0x9e5   :  { %v2658_v8 = vmax.f32 %v2656_v61, %v2657_v2 }
 0x9e7   :  { %v2659_v7 = vrot.slane %v2658_v8, 2 }
 0x9e9   :  { %v2660_v44 = vmax.f32 %v2658_v8, %v2659_v7 }
 0x9eb   :  { %v2661_v53 = vrot.slane %v2660_v44, 1 }
 0x9ed   :  { %v2662_v15 = vmax.f32 %v2660_v44, %v2661_v53 }
 0x9ef   :  { %v2663_v41 = vsub.f32 %v2654_v19, %v2662_v15  ;;  %v5885_v17 = vpop.f32.mrb[26].mxu0 }
 0x9f0   :  { %v2759_v22 = vadd.f32 %v5885_v17, %v6522_v21  ;;  %v2753_v60 = vpop.f32.mrb[27].mxu0 }
 0x9f1   :  { %v2664_v28 = vmul.f32 1.442695, %v2663_v41  ;;  %v2754_v0 = vadd.f32 %v2753_v60, %v6520_v20 }
 0x9f2   :  { %v2765_v42 = vmin.f32 %v2759_v22, 0.0  ;;  %vm2763_vm0 = vcmp.gt.f32.partialorder %v2759_v22, 0.0 }
 0x9f3   :  { %6360 = vpow2.f32 %v2664_v28  ;;  %v2764_v39 = vmin.f32 %v2754_v0, 0.0  ;;  %vm2762_vm2 = vcmp.gt.f32.partialorder %v2754_v0, 0.0 }
 0x9f4   :  { %v2768_v49 = vmul.f32 1.442695, %v2765_v42 }
 0x9f5   :  { %v2766_v4 = vmul.f32 1.442695, %v2764_v39 }
 0x9f6   :  { %6362 = vpow2.f32 %v2768_v49 }
 0x9f7   :  { %6364 = vpow2.f32 %v2766_v4 }
 0x9fd   :  { %v6361_v10 = vpop.eup %6360 }
 0x9fe   :  { %v2667_v18 = vsel %vm2655_vm15, %v6361_v10, 0.0 }
 0x9ff   :  { %v2668_v59 = vrot.slane %v2667_v18, 4 }
 0xa00   :  { %v6363_v1 = vpop.eup %6362 }
 0xa01   :  { %v6365_v19 = vpop.eup %6364  ;;  %v2669_v61 = vadd.f32 %v2668_v59, %v2667_v18  ;;  %v5286_v2 = vadd.f32 -1.0, %v6363_v1 }
 0xa02   :  { %v5285_v21 = vadd.f32 -1.0, %v6365_v19 }
 0xa03   :  { %v2670_v8 = vrot.slane %v2669_v61, 2  ;;  %v2773_v7 = vsel %vm2763_vm0, %v2759_v22, %v5286_v2 }
 0xa04   :  { %v2775_v20 = vmul.f32 %v2773_v7, %v6528_v31  ;;  %v2772_v44 = vsel %vm2762_vm2, %v2754_v0, %v5285_v21 }
 0xa05   :  { %v2671_v53 = vadd.f32 %v2670_v8, %v2669_v61  ;;  %v2774_v15 = vmul.f32 %v2772_v44, %v6526_v30 }
 0xa06   :  { %v2777_v17 = vadd.f32 %v2775_v20, %v6530_v37 }
 0xa07   :  { %v2672_v60 = vrot.slane %v2671_v53, 1  ;;  %v2776_v28 = vadd.f32 %v2774_v15, %v6533_v40  ;;  %v5320_v15 = vld [vmem:[%s7254_s9 + $0x40] sm:$0xf] }
 0xa09   :  { %v2673_v42 = vadd.f32 %v2672_v60, %v2671_v53  ;;  %v6217_v39 = vpack.c.bf16 %v2777_v17, %v2776_v28 }
 0xa0b   :  { %6366 = vlog2.f32 %v2673_v42  ;;  %6218 = vmatprep.subr.bf16.mxu1 %v6217_v39 }
 0xa0c   :  { %6220 = vmatpush3.bf16.msra.mxu1 %v6217_v39 }
 0xa0d   :  { %6222 = vmatprep.subr.bf16.mxu1 %v6544_v47 }
 0xa0f   :  { %5891 = vmatmul.mubr.msk.f32.vlgmr.msra.gmra.mrb[20].mxu1 %vm221_vm1, %v6549_v48 }
 0xa10   :  { %6224 = vmatpush3.bf16.msra.mxu1 %v6544_v47 }
 0xa11   :  { %6226 = vmatprep.subr.bf16.mxu1 %v6561_v51 }
 0xa15   :  { %v6367_v30 = vpop.eup %6366 }
 0xa16   :  { %v2675_v31 = vmul.f32 0.6931472, %v6367_v30 }
 0xa18   :  { %v2676_v37 = vsub.f32 %v2663_v41, %v2675_v31 }
 0xa1a   :  { %2677 = vst.msk [vmem:[%s7262_s15] sm:$0xff] %vm2655_vm15, %v2676_v37 }
 0xae2   :  { %v5892_v40 = vpop.f32.mrb[20].mxu1 }
 0xae3   :  { %v2844_v22 = vpop.f32.mrb[21].mxu1 }
 0xae4   :  { %5897 = vmatprep.mubr.msk.f32.mxu1 %vm221_vm1, %v2844_v22 }
 0xae5   :  { %5898 = vmatmul.mubr.msk.f32.vlgmr.msra.gmra.mrb[22].mxu1 %vm221_vm1, %v5892_v40 }
 0xae6   :  { %5904 = vmatprep.mubr.msk.f32.mxu1 %vm221_vm1, %v2776_v28  ;;  %6228 = vmatpush3.bf16.msra.mxu1 %v6561_v51 }
 0xae7   :  { %6230 = vmatprep.subr.bf16.mxu1 %v6578_v57 }
 0xaed   :  { %5905 = vmatmul.mubr.msk.f32.vlgmr.msra.gmra.mrb[22].mxu1 %vm221_vm1, %v2777_v17 }
 0xaee   :  { %6232 = vmatpush3.bf16.msra.mxu1 %v6578_v57 }
 0xaef   :  { %6234 = vmatprep.subr.bf16.mxu1 %v6598_v63 }
 0xaf2   :  { %6236 = vmatpush3.bf16.msra.mxu1 %v6598_v63 }
 0xaf3   :  { %6238 = vmatprep.subr.bf16.mxu1 %v6618_v6 }
 0xaf6   :  { %6240 = vmatpush3.bf16.msra.mxu1 %v6618_v6 }
 0xaf7   :  { %6242 = vmatprep.subr.bf16.mxu1 %v6638_v13 }
 0xafa   :  { %6244 = vmatpush3.bf16.msra.mxu1 %v6638_v13 }
 0xafb   :  { %5923 = vmatprep.subr.mxu1 %v6652_v16 }
 0xafe   :  { %5924 = vmatpush3.msra.mxu1 %v6652_v16 }
 0xaff   :  { %6261 = vmatprep.subr.bf16.mxu1 %v7281_v58 }
 0xbc0   :  { %v5906_v47 = vpop.f32.mrb[22].mxu1 }
 0xbc1   :  { %v3016_v48 = vadd.f32 %v5906_v47, %v6666_v27  ;;  %v3006_v51 = vpop.f32.mrb[23].mxu1 }
 0xbc2   :  { %v3015_v57 = vadd.f32 %v3006_v51, %v6666_v27 }
 0xbc3   :  { %v3020_v63 = vmin.f32 %v3016_v48, 0.0  ;;  %vm3018_vm3 = vcmp.gt.f32.partialorder %v3016_v48, 0.0 }
 0xbc4   :  { %v3019_v41 = vmin.f32 %v3015_v57, 0.0  ;;  %vm3017_vm4 = vcmp.gt.f32.partialorder %v3015_v57, 0.0 }
 0xbc5   :  { %v3023_v0 = vmul.f32 1.442695, %v3020_v63 }
 0xbc6   :  { %v3021_v6 = vmul.f32 1.442695, %v3019_v41 }
 0xbc7   :  { %6368 = vpow2.f32 %v3023_v0  ;;  %v7284_v0 = vld [vmem:[#allocation3_spill] sm:$0xff] }
 0xbc8   :  { %6370 = vpow2.f32 %v3021_v6 }
 0xbd1   :  { %v6369_v49 = vpop.eup %6368 }
 0xbd2   :  { %v6371_v13 = vpop.eup %6370  ;;  %v5294_v4 = vadd.f32 -1.0, %v6369_v49 }
 0xbd3   :  { %v5293_v10 = vadd.f32 -1.0, %v6371_v13  ;;  %v7285_v13 = vld [vmem:[#allocation4_spill] sm:$0xff] }
 0xbd4   :  { %v3028_v16 = vsel %vm3018_vm3, %v3016_v48, %v5294_v4 }
 0xbd5   :  { %v3030_v18 = vmul.f32 %v3028_v16, %v6670_v43  ;;  %v3027_v59 = vsel %vm3017_vm4, %v3015_v57, %v5293_v10 }
 0xbd6   :  { %v3029_v1 = vmul.f32 %v3027_v59, %v6670_v43 }
 0xbd7   :  { %v3032_v19 = vadd.f32 %v3030_v18, %v6672_v50 }
 0xbd8   :  { %v3031_v27 = vadd.f32 %v3029_v1, %v6672_v50 }
 0xbda   :  { %5925 = vmatprep.mubr.msk.f32.mxu1 %vm495_vm6, %v3031_v27  ;;  %5946 = vmatprep.mubr.msk.f32.mxu0 %vm495_vm6, %v3031_v27 }
 0xbdb   :  { %5926 = vmatmul.mubr.msk.f32.vlgmr.msra.gmra.mrb[24].mxu1 %vm495_vm6, %v3032_v19  ;;  %5947 = vmatmul.mubr.msk.f32.vlgmr.msra.gmra.mrb[28].mxu0 %vm495_vm6, %v3032_v19 }
 0xbdc   :  { %5953 = vmatprep.mubr.msk.f32.mxu1 %vm6384_vm7, %v7282_v34  ;;  %5960 = vmatprep.mubr.msk.f32.mxu0 %vm6384_vm7, %v7282_v34 }
 0xcae   :  { %v5927_v61 = vpop.f32.mrb[24].mxu1  ;;  %v5948_v43 = vpop.f32.mrb[28].mxu0 }
 0xcaf   :  { %v3190_v2 = vmax.f32 %v5927_v61, %v5948_v43  ;;  %v3105_v21 = vpop.f32.mrb[25].mxu1  ;;  %v3180_v8 = vpop.f32.mrb[29].mxu0 }
 0xcb0   :  { %v3189_v50 = vmax.f32 %v3105_v21, %v3180_v8 }
 0xcb2   :  { %v6262_v7 = vpack.c.bf16 %v3190_v2, %v3189_v50  ;;  %v7286_v2 = vld [vmem:[#allocation6_spill] sm:$0xff]  ;;  %v7287_v50 = vld [vmem:[#allocation5_spill] sm:$0xff] }
 0xcb4   :  { %6263 = vmatpush3.bf16.msra.mxu1 %v6262_v7  ;;  %6266 = vmatpush3.bf16.msra.mxu0 %v6262_v7 }
 0xcb5   :  { %6270 = vmatprep.subr.bf16.mxu0 %v7281_v58  ;;  %6267 = vmatprep.subr.bf16.mxu1 %v7281_v58 }
 0xcb7   :  { %5954 = vmatmul.mubr.msk.f32.vlgmr.msra.gmra.mrb[26].mxu1 %vm221_vm1, %v6703_v23  ;;  %5961 = vmatmul.mubr.msk.f32.vlgmr.msra.gmra.mrb[30].mxu0 %vm221_vm1, %v6708_v24  ;;  %v5307_v23 = vld [vmem:[%s7254_s9 + $0x28] sm:$0xf]  ;;  %v3336_v24 = vld [vmem:[%s7254_s9 + $0x10] sm:$0xf] }
 0xcb8   :  { %6272 = vmatpush3.bf16.msra.mxu0 %v6710_v25  ;;  %6269 = vmatpush3.bf16.msra.mxu1 %v6712_v26 }
 0xcb9   :  { %5976 = vmatprep.subr.mxu0 %v7282_v34  ;;  %5967 = vmatprep.subr.mxu1 %v7282_v34 }
 0xcba   :  { %5969 = vmatprep.mubr.msk.f32.mxu1 %vm6384_vm7, %v7282_v34  ;;  %5978 = vmatprep.mubr.msk.f32.mxu0 %vm6384_vm7, %v7282_v34 }
 0xcbc   :  { %5977 = vmatpush3.msk.msra.mxu0 %vm810_vm8, %v5307_v23  ;;  %5968 = vmatpush3.msk.msra.mxu1 %vm810_vm8, %v3336_v24  ;;  %v7288_v23 = vld [vmem:[#allocation7_spill] sm:$0xff] }
 0xcbd   :  { %6273 = vmatprep.subr.bf16.mxu0 %v7281_v58 }
 0xd8a   :  { %v3257_v25 = vpop.f32.mrb[26].mxu1  ;;  %v3327_v26 = vpop.f32.mrb[30].mxu0 }
 0xd8b   :  { %v3331_v20 = vmax.f32 %v3257_v25, %v3327_v26  ;;  %v5955_v44 = vpop.f32.mrb[27].mxu1  ;;  %v5962_v53 = vpop.f32.mrb[31].mxu0  ;;  %v7289_v25 = vld [vmem:[#allocation8_spill] sm:$0xff] }
 0xd8d   :  { %5970 = vmatmul.mubr.msk.f32.vlgmr.msra.gmra.mrb[28].mxu1 %vm806_vm9, %v3331_v20  ;;  %5979 = vmatmul.mubr.msk.f32.vlgmr.msra.gmra.mrb[32].mxu0 %vm806_vm9, %v3331_v20 }
 0xd8e   :  { %6275 = vmatpush3.bf16.msra.mxu0 %v6743_v36  ;;  %5997 = vmatprep.mubr.msk.f32.mxu0 %vm6384_vm7, %v7282_v34  ;;  %v5330_v36 = vld [vmem:[%s7254_s9 + $0x58] sm:$0xf] }
 0xd8f   :  { %5995 = vmatprep.subr.mxu0 %v7282_v34  ;;  %5983 = vmatprep.mubr.msk.f32.mxu1 %vm964_vm10, %v6777_v52 }
 0xd92   :  { %5996 = vmatpush3.msk.msra.mxu0 %vm810_vm8, %v5320_v15 }
 0xd93   :  { %5998 = vmatmul.mubr.msk.f32.vlgmr.msra.gmra.mrb[34].mxu0 %vm806_vm9, %v3331_v20  ;;  %6276 = vmatprep.subr.bf16.mxu0 %v7281_v58 }
 0xd94   :  { %6278 = vmatpush3.bf16.msra.mxu0 %v6760_v46  ;;  %6011 = vmatprep.mubr.msk.f32.mxu0 %vm6384_vm7, %v7282_v34 }
 0xd95   :  { %6009 = vmatprep.subr.mxu0 %v7282_v34 }
 0xd98   :  { %6010 = vmatpush3.msk.msra.mxu0 %vm810_vm8, %v5330_v36 }
 0xd99   :  { %6012 = vmatmul.mubr.msk.f32.vlgmr.msra.gmra.mrb[36].mxu0 %vm806_vm9, %v3331_v20 }
 0xe60   :  { %v3409_v52 = vpop.f32.mrb[28].mxu1  ;;  %v3487_v17 = vpop.f32.mrb[32].mxu0 }
 0xe61   :  { %v5971_v60 = vpop.f32.mrb[29].mxu1  ;;  %v5980_v28 = vpop.f32.mrb[33].mxu0  ;;  %5981 = vmatprep.subr.msk.mxu1 %vm810_vm8, %v3487_v17 }
 0xe62   :  { %5982 = vmatpush3.msk.msra.mxu1 %vm810_vm8, %v3487_v17 }
 0xe63   :  { %5984 = vmatmul.mubr.msk.f32.vlgmr.msra.gmra.mrb[30].mxu1 %vm964_vm10, %v6784_v55  ;;  %5986 = vmatprep.subr.msk.mxu1 %vm810_vm8, %v3409_v52 }
 0xe64   :  { %5987 = vmatpush3.msk.msra.mxu1 %vm810_vm8, %v3409_v52  ;;  %5988 = vmatprep.mubr.msk.f32.mxu1 %vm964_vm10, %v6790_v62  ;;  %v3989_v62 = vld [vmem:[%s7257_s11] sm:$0x1f] }
 0xe65   :  { %6019 = vmatprep.subr.msk.mxu0 %vm1475_vm11, %v3989_v62 }
 0xe66   :  { %v3733_v46 = vpop.f32.mrb[34].mxu0  ;;  %6020 = vmatpush3.msk.msra.mxu0 %vm1475_vm11, %v3989_v62 }
 0xe67   :  { %v5999_v42 = vpop.f32.mrb[35].mxu0  ;;  %6000 = vmatprep.subr.msk.mxu1 %vm810_vm8, %v3733_v46 }
 0xe6b   :  { %5989 = vmatmul.mubr.msk.f32.vlgmr.msra.gmra.mrb[30].mxu1 %vm964_vm10, %v6803_v3  ;;  %v5343_v3 = vld [vmem:[%s7257_s11 + $0x8] sm:$0x1f] }
 0xe6c   :  { %6001 = vmatpush3.msk.msra.mxu1 %vm810_vm8, %v3733_v46  ;;  %v3897_v39 = vpop.f32.mrb[36].mxu0  ;;  %6002 = vmatprep.mubr.msk.f32.mxu1 %vm964_vm10, %v6808_v5 }
 0xe6d   :  { %v6013_v55 = vpop.f32.mrb[37].mxu0  ;;  %6014 = vmatprep.subr.msk.mxu1 %vm810_vm8, %v3897_v39  ;;  %6031 = vmatprep.subr.msk.mxu0 %vm1475_vm11, %v5343_v3 }
 0xe73   :  { %6003 = vmatmul.mubr.msk.f32.vlgmr.msra.gmra.mrb[30].mxu1 %vm964_vm10, %v6819_v11 }
 0xe74   :  { %6015 = vmatpush3.msk.msra.mxu1 %vm810_vm8, %v3897_v39  ;;  %6016 = vmatprep.mubr.msk.f32.mxu1 %vm964_vm10, %v6824_v12  ;;  %v5351_v12 = vld [vmem:[%s7257_s11 + $0x10] sm:$0x1f] }
 0xe7b   :  { %6017 = vmatmul.mubr.msk.f32.vlgmr.msra.gmra.mrb[30].mxu1 %vm964_vm10, %v6834_v14  ;;  %v5359_v14 = vld [vmem:[%s7257_s11 + $0x18] sm:$0x1f] }
 0xe7c   :  { %6028 = vmatprep.mubr.msk.f32.mxu1 %vm221_vm1, %v6869_v38 }
 0xf4e   :  { %v6018_v5 = vpop.f32.mrb[30].mxu1 }
 0xf4f   :  { %v3976_v11 = vpop.f32.mrb[31].mxu1 }
 0xf50   :  { %6021 = vmatprep.mubr.msk.f32.mxu0 %vm1468_vm12, %v3976_v11 }
 0xf51   :  { %6022 = vmatmul.mubr.msk.f32.vlgmr.msra.gmra.mrb[38].mxu0 %vm1468_vm12, %v6018_v5 }
 0xf52   :  { %6033 = vmatprep.mubr.msk.f32.mxu0 %vm1468_vm12, %v3976_v11  ;;  %6032 = vmatpush3.msk.msra.mxu0 %vm1475_vm11, %v5343_v3 }
 0xf53   :  { %6043 = vmatprep.subr.msk.mxu0 %vm1475_vm11, %v5351_v12 }
 0xf55   :  { %6034 = vmatmul.mubr.msk.f32.vlgmr.msra.gmra.mrb[40].mxu0 %vm1468_vm12, %v6018_v5 }
 0xf56   :  { %6045 = vmatprep.mubr.msk.f32.mxu0 %vm1468_vm12, %v3976_v11  ;;  %6044 = vmatpush3.msk.msra.mxu0 %vm1475_vm11, %v5351_v12 }
 0xf57   :  { %6055 = vmatprep.subr.msk.mxu0 %vm1475_vm11, %v5359_v14 }
 0xf59   :  { %6046 = vmatmul.mubr.msk.f32.vlgmr.msra.gmra.mrb[42].mxu0 %vm1468_vm12, %v6018_v5 }
 0xf5a   :  { %6057 = vmatprep.mubr.msk.f32.mxu0 %vm1468_vm12, %v3976_v11  ;;  %6056 = vmatpush3.msk.msra.mxu0 %vm1475_vm11, %v5359_v14 }
 0xf5d   :  { %6058 = vmatmul.mubr.msk.f32.vlgmr.msra.gmra.mrb[44].mxu0 %vm1468_vm12, %v6018_v5 }
0x1024   :  { %v6023_v38 = vpop.f32.mrb[38].mxu0 }
0x1025   :  { %v4065_v30 = vpop.f32.mrb[39].mxu0 }
0x1026   :  { %v6279_v31 = vpack.c.bf16 %v6023_v38, %v4065_v30 }
0x1028   :  { %6280 = vmatprep.subr.bf16.mxu1 %v6279_v31  ;;  %v6035_v37 = vpop.f32.mrb[40].mxu0 }
0x1029   :  { %6282 = vmatpush3.bf16.msra.mxu1 %v6279_v31  ;;  %v4229_v40 = vpop.f32.mrb[41].mxu0 }
0x102a   :  { %v6283_v22 = vpack.c.bf16 %v6035_v37, %v4229_v40 }
0x102c   :  { %6029 = vmatmul.mubr.msk.f32.vlgmr.msra.gmra.mrb[32].mxu1 %vm221_vm1, %v6885_v54  ;;  %6284 = vmatprep.subr.bf16.mxu1 %v6283_v22  ;;  %v6047_v47 = vpop.f32.mrb[42].mxu0  ;;  %v7283_v54 = vld [vmem:[#allocation2_spill] sm:$0xff] }
0x102d   :  { %6286 = vmatpush3.bf16.msra.mxu1 %v6283_v22  ;;  %v4393_v48 = vpop.f32.mrb[43].mxu0  ;;  %6040 = vmatprep.mubr.msk.f32.mxu1 %vm221_vm1, %v6890_v56  ;;  %v4665_v56 = vld [vmem:[%s7260_s13] sm:$0x1f] }
0x102e   :  { %v6287_v51 = vpack.c.bf16 %v6047_v47, %v4393_v48  ;;  %6067 = vmatprep.subr.msk.mxu0 %vm1475_vm11, %v4665_v56 }
0x102f   :  { %6068 = vmatpush3.msk.msra.mxu0 %vm1475_vm11, %v4665_v56 }
0x1030   :  { %6288 = vmatprep.subr.bf16.mxu1 %v6287_v51  ;;  %v6059_v57 = vpop.f32.mrb[44].mxu0 }
0x1031   :  { %v4557_v63 = vpop.f32.mrb[45].mxu0 }
0x1032   :  { %v6291_v41 = vpack.c.bf16 %v6059_v57, %v4557_v63 }
0x1034   :  { %6041 = vmatmul.mubr.msk.f32.vlgmr.msra.gmra.mrb[32].mxu1 %vm221_vm1, %v6899_v9  ;;  %v5370_v9 = vld [vmem:[%s7260_s13 + $0x8] sm:$0x1f] }
0x1035   :  { %6290 = vmatpush3.bf16.msra.mxu1 %v6287_v51  ;;  %6052 = vmatprep.mubr.msk.f32.mxu1 %vm221_vm1, %v6904_v29  ;;  %v5374_v29 = vld [vmem:[%s7260_s13 + $0x10] sm:$0x1f] }
0x1036   :  { %6292 = vmatprep.subr.bf16.mxu1 %v6291_v41  ;;  %6077 = vmatprep.subr.msk.mxu0 %vm1475_vm11, %v5374_v29 }
0x103c   :  { %6053 = vmatmul.mubr.msk.f32.vlgmr.msra.gmra.mrb[32].mxu1 %vm221_vm1, %v6913_v32  ;;  %v5378_v32 = vld [vmem:[%s7260_s13 + $0x18] sm:$0x1f] }
0x103d   :  { %6294 = vmatpush3.bf16.msra.mxu1 %v6291_v41  ;;  %6064 = vmatprep.mubr.msk.f32.mxu1 %vm221_vm1, %v6918_v33 }
0x103e   :  { %6072 = vmatprep.subr.msk.mxu1 %vm1475_vm11, %v5370_v9 }
0x1044   :  { %6065 = vmatmul.mubr.msk.f32.vlgmr.msra.gmra.mrb[32].mxu1 %vm221_vm1, %v7283_v54 }
0x1045   :  { %6073 = vmatpush3.msk.msra.mxu1 %vm1475_vm11, %v5370_v9 }
0x1046   :  { %6082 = vmatprep.subr.msk.mxu1 %vm1475_vm11, %v5378_v32 }
0x1117   :  { %v6066_v33 = vpop.f32.mrb[32].mxu1 }
0x1118   :  { %v6303_v6 = vadd.f32 %v6066_v33, %v7284_v0  ;;  %v4638_v49 = vpop.f32.mrb[33].mxu1 }
0x1119   :  { %v6304_v4 = vadd.f32 %v4638_v49, %v7285_v13 }
0x111a   :  { %v4652_v10 = vmin.f32 %v6303_v6, 0.0  ;;  %vm4650_vm5 = vcmp.gt.f32.partialorder %v6303_v6, 0.0 }
0x111b   :  { %v4651_v16 = vmin.f32 %v6304_v4, 0.0  ;;  %vm4649_vm6 = vcmp.gt.f32.partialorder %v6304_v4, 0.0 }
0x111c   :  { %v4655_v18 = vmul.f32 1.442695, %v4652_v10 }
0x111d   :  { %v4653_v59 = vmul.f32 1.442695, %v4651_v16 }
0x111e   :  { %6372 = vpow2.f32 %v4655_v18 }
0x111f   :  { %6374 = vpow2.f32 %v4653_v59 }
0x1128   :  { %v6373_v1 = vpop.eup %6372 }
0x1129   :  { %v6375_v27 = vpop.eup %6374  ;;  %v5366_v19 = vadd.f32 -1.0, %v6373_v1 }
0x112a   :  { %v5365_v61 = vadd.f32 -1.0, %v6375_v27 }
0x112b   :  { %v4660_v43 = vsel %vm4650_vm5, %v6303_v6, %v5366_v19 }
0x112c   :  { %v4662_v21 = vmul.f32 %v4660_v43, %v7286_v2  ;;  %v4659_v8 = vsel %vm4649_vm6, %v6304_v4, %v5365_v61 }
0x112d   :  { %v4661_v7 = vmul.f32 %v4659_v8, %v7287_v50 }
0x112e   :  { %v4664_v26 = vadd.f32 %v4662_v21, %v7289_v25 }
0x112f   :  { %v4663_v24 = vadd.f32 %v4661_v7, %v7288_v23 }
0x1131   :  { %6069 = vmatprep.mubr.msk.f32.mxu0 %vm1468_vm12, %v4663_v24  ;;  %6074 = vmatprep.mubr.msk.f32.mxu1 %vm1468_vm12, %v4663_v24 }
0x1132   :  { %6070 = vmatmul.mubr.msk.f32.vlgmr.msra.gmra.mrb[46].mxu0 %vm1468_vm12, %v4664_v26  ;;  %6075 = vmatmul.mubr.msk.f32.vlgmr.msra.gmra.mrb[34].mxu1 %vm1468_vm12, %v4664_v26 }
0x1133   :  { %6079 = vmatprep.mubr.msk.f32.mxu0 %vm1468_vm12, %v4663_v24  ;;  %6084 = vmatprep.mubr.msk.f32.mxu1 %vm1468_vm12, %v4663_v24 }
0x1134   :  { %6078 = vmatpush3.msk.msra.mxu0 %vm1475_vm11, %v5374_v29  ;;  %6083 = vmatpush3.msk.msra.mxu1 %vm1475_vm11, %v5378_v32 }
0x1135   :  { %6295 = vmatprep.subr.bf16.mxu0 %v7281_v58  ;;  %6298 = vmatprep.subr.bf16.mxu1 %v7281_v58 }
0x1136   :  { %6080 = vmatmul.mubr.msk.f32.vlgmr.msra.gmra.mrb[48].mxu0 %vm1468_vm12, %v4664_v26  ;;  %6085 = vmatmul.mubr.msk.f32.vlgmr.msra.gmra.mrb[36].mxu1 %vm1468_vm12, %v4664_v26 }
0x1137   :  { %6091 = vmatprep.mubr.msk.f32.mxu0 %vm6384_vm7, %v7282_v34  ;;  %6098 = vmatprep.mubr.msk.f32.mxu1 %vm6384_vm7, %v7282_v34 }
0x1205   :  { %v6071_v20 = vpop.f32.mrb[46].mxu0  ;;  %v6076_v44 = vpop.f32.mrb[34].mxu1 }
0x1206   :  { %v4830_v53 = vmax.f32 %v6071_v20, %v6076_v44  ;;  %v4741_v15 = vpop.f32.mrb[47].mxu0  ;;  %v4820_v36 = vpop.f32.mrb[35].mxu1 }
0x1207   :  { %v4829_v52 = vmax.f32 %v4741_v15, %v4820_v36 }
0x1209   :  { %v6081_v17 = vpop.f32.mrb[48].mxu0  ;;  %v6086_v60 = vpop.f32.mrb[36].mxu1 }
0x120a   :  { %v4911_v28 = vmax.f32 %v4830_v53, %v6081_v17  ;;  %v4901_v58 = vpop.f32.mrb[49].mxu0  ;;  %v4982_v46 = vpop.f32.mrb[37].mxu1 }
0x120b   :  { %v4910_v42 = vmax.f32 %v4829_v52, %v4901_v58 }
0x120c   :  { %v4992_v39 = vmax.f32 %v4911_v28, %v6086_v60 }
0x120d   :  { %v4991_v55 = vmax.f32 %v4910_v42, %v4982_v46 }
0x120f   :  { %v6296_v62 = vpack.c.bf16 %v4992_v39, %v4991_v55 }
0x1211   :  { %6297 = vmatpush3.bf16.msra.mxu0 %v6296_v62  ;;  %6300 = vmatpush3.bf16.msra.mxu1 %v6296_v62 }
0x1214   :  { %6092 = vmatmul.mubr.msk.f32.vlgmr.msra.gmra.mrb[50].mxu0 %vm221_vm1, %v6998_v35  ;;  %6099 = vmatmul.mubr.msk.f32.vlgmr.msra.gmra.mrb[38].mxu1 %vm221_vm1, %v7003_v45 }
0x12e7   :  { %v5059_v34 = vpop.f32.mrb[50].mxu0  ;;  %v5129_v3 = vpop.f32.mrb[38].mxu1 }
0x12e8   :  { %v5133_v5 = vmax.f32 %v5059_v34, %v5129_v3  ;;  %v6093_v11 = vpop.f32.mrb[51].mxu0  ;;  %v6100_v12 = vpop.f32.mrb[39].mxu1 }
0x12ea   :  { %v5134_v14 = vsel %vm2655_vm15, %v5133_v5, -inf }
0x12eb   :  { %v5135_v38 = vrot.slane %v5134_v14, 4 }
0x12ed   :  { %v5136_v30 = vmax.f32 %v5134_v14, %v5135_v38 }
0x12ef   :  { %v5137_v31 = vrot.slane %v5136_v30, 2 }
0x12f1   :  { %v5138_v37 = vmax.f32 %v5136_v30, %v5137_v31 }
0x12f3   :  { %v5139_v40 = vrot.slane %v5138_v37, 1 }
0x12f5   :  { %v5140_v22 = vmax.f32 %v5138_v37, %v5139_v40 }
0x12f7   :  { %v5141_v47 = vsub.f32 %v5133_v5, %v5140_v22 }
0x12f9   :  { %v5142_v48 = vmul.f32 1.442695, %v5141_v47 }
0x12fb   :  { %6376 = vpow2.f32 %v5142_v48 }
0x1305   :  { %v6377_v35 = vpop.eup %6376 }
0x1306   :  { %v5145_v51 = vsel %vm2655_vm15, %v6377_v35, 0.0 }
0x1307   :  { %v5146_v45 = vrot.slane %v5145_v51, 4 }
0x1309   :  { %v5147_v57 = vadd.f32 %v5146_v45, %v5145_v51 }
0x130b   :  { %v5148_v63 = vrot.slane %v5147_v57, 2 }
0x130d   :  { %v5149_v41 = vadd.f32 %v5148_v63, %v5147_v57 }
0x130f   :  { %v5150_v54 = vrot.slane %v5149_v41, 1 }
0x1311   :  { %v5151_v56 = vadd.f32 %v5150_v54, %v5149_v41 }
0x1313   :  { %6378 = vlog2.f32 %v5151_v56 }
0x131d   :  { %v6379_v9 = vpop.eup %6378 }
0x131e   :  { %v5153_v29 = vmul.f32 0.6931472, %v6379_v9 }
0x1320   :  { %v5154_v32 = vsub.f32 %v5141_v47, %v5153_v29 }
0x1322   :  { %5384 = vst.msk [vmem:[%s7262_s15 + $0x8] sm:$0xff] %vm2655_vm15, %v5154_v32 }

</bundles_post_ra>
